<compile_context>
chip_gen: v7x
topology: tpu7x:2x2x1
jax: 0.10.0
libtpu: 0.0.40
codegen_flags: <defaults>
</compile_context>

<pallas_src>
import functools

import numpy as np
import jax
import jax.numpy as jnp
from jax import lax
from jax.experimental import pallas as pl
from jax.experimental.pallas import tpu as pltpu

PAD_ID, UNK_ID, START_ID, EOS_ID = 0, 1, 2, 3  # synthetic vocab special ids


# ----------------------------- encoder kernel -----------------------------
# Single invocation (no grid): the whole (L, B, E) embedded source sits in VMEM
# and the strictly-serial LSTM recurrence runs as an in-kernel fori_loop.
# enc_out is emitted directly in (B, L, H) layout; h_n / c_n written once.

def encoder_kernel(x_ref, w_ih_ref, w_hh_ref, b_ref,
                   enc_out_ref, h_n_ref, c_n_ref, *, L, H):
    w_ih = w_ih_ref[...]        # (E, 4H)
    w_hh = w_hh_ref[...]        # (H, 4H)
    b = b_ref[...]              # (1, 4H)   -- b_ih + b_hh pre-summed by the caller

    def step(t, carry):
        h, c = carry
        x = x_ref[t]            # (B, E), dynamic leading index
        gates = (jnp.dot(x, w_ih, preferred_element_type=jnp.float32)
                 + jnp.dot(h, w_hh, preferred_element_type=jnp.float32)
                 + b)           # (B, 4H), PyTorch gate order i, f, g, o
        i = jax.nn.sigmoid(gates[:, 0 * H:1 * H])
        f = jax.nn.sigmoid(gates[:, 1 * H:2 * H])
        g = jnp.tanh(gates[:, 2 * H:3 * H])
        o = jax.nn.sigmoid(gates[:, 3 * H:4 * H])
        c_new = f * c + i * g
        h_new = o * jnp.tanh(c_new)
        # write encoder output for timestep t directly in (B, L, H) layout
        enc_out_ref[:, pl.ds(t, 1), :] = h_new[:, None, :]
        return h_new, c_new

    h0 = jnp.zeros(h_n_ref.shape, jnp.float32)
    c0 = jnp.zeros(c_n_ref.shape, jnp.float32)
    h_f, c_f = lax.fori_loop(0, L, step, (h0, c0), unroll=True)
    h_n_ref[...] = h_f          # stored exactly once
    c_n_ref[...] = c_f


def run_encoder(x_emb, w_ih, w_hh, b):
    L, B, E = x_emb.shape
    H = w_hh.shape[0]
    kernel = functools.partial(encoder_kernel, L=L, H=H)
    vmem = lambda: pl.BlockSpec(memory_space=pltpu.MemorySpace.VMEM)
    enc_out, h_n, c_n = pl.pallas_call(
        kernel,
        out_shape=(jax.ShapeDtypeStruct((B, L, H), jnp.float32),   # (B, L, H)!
                   jax.ShapeDtypeStruct((B, H), jnp.float32),
                   jax.ShapeDtypeStruct((B, H), jnp.float32)),
        in_specs=[vmem() for _ in range(4)],
        out_specs=(vmem(), vmem(), vmem()),
    )(x_emb, w_ih, w_hh, b)
    return enc_out, h_n, c_n


# --------------------------- fused greedy decoder ---------------------------
# One pallas_call for the whole max_len greedy loop.  All weights, ref
# embedding, enc outputs and the mask stay resident in VMEM; per step we run
# the decoder LSTM cell, masked dot-product attention (MXU einsums),
# fc + tanh, the output projection, an in-kernel argmax over logits, and the
# next-token embedding lookup as a one-hot @ ref_emb matmul.  Only the
# (B, max_len) int32 id matrix is written out.

def greedy_decode_kernel(dec_in0_ref, h0_ref, c0_ref, enc_ref, mask_ref,
                         ref_emb_ref,
                         w_ih_ref, w_hh_ref, b_dec_ref,
                         w_fc_c_ref, w_fc_d_ref, b_fc_ref,
                         w_out_ref, b_out_ref,
                         ids_ref, *, max_len, H, V):
    B = h0_ref.shape[0]

    # hoisted, loop-invariant loads / constants
    enc = enc_ref[...]                   # (B, L, H)
    mask_bool = mask_ref[...] > 0.0      # (B, L)
    ref_emb = ref_emb_ref[...]           # (V, E)
    w_ih, w_hh, b_dec = w_ih_ref[...], w_hh_ref[...], b_dec_ref[...]
    w_fc_c, w_fc_d, b_fc = w_fc_c_ref[...], w_fc_d_ref[...], b_fc_ref[...]
    w_out, b_out = w_out_ref[...], b_out_ref[...]

    neg_big = jnp.float32(-1e9)
    vocab_iota = lax.broadcasted_iota(jnp.int32, (B, V), 1)            # (B, V)
    rev_iota_f = (V - vocab_iota).astype(jnp.float32)                  # (B, V)
    step_iota = lax.broadcasted_iota(jnp.int32, (B, max_len), 1)       # (B, max_len)

    def step(t, carry):
        x, h, c, ids_acc = carry

        # ---- decoder LSTM cell ----
        gates = (jnp.dot(x, w_ih, preferred_element_type=jnp.float32)
                 + jnp.dot(h, w_hh, preferred_element_type=jnp.float32)
                 + b_dec)                                              # (B, 4H)
        i = jax.nn.sigmoid(gates[:, 0 * H:1 * H])
        f = jax.nn.sigmoid(gates[:, 1 * H:2 * H])
        g = jnp.tanh(gates[:, 2 * H:3 * H])
        o = jax.nn.sigmoid(gates[:, 3 * H:4 * H])
        c_new = f * c + i * g
        h_new = o * jnp.tanh(c_new)                                    # dec_output (B, H)

        # ---- masked dot-product attention (MXU batched matmuls, q = 1) ----
        scores = jnp.einsum('bqh,blh->bql', h_new[:, None, :], enc,
                            preferred_element_type=jnp.float32)[:, 0, :]   # (B, L)
        scores = jnp.where(mask_bool, scores, neg_big)
        m = jnp.max(scores, axis=-1, keepdims=True)
        e = jnp.exp(scores - m)
        denom = jnp.sum(e, axis=-1, keepdims=True)
        attn = e * pl.reciprocal(denom, approx=True)                   # (B, L)
        context = jnp.einsum('bql,blh->bqh', attn[:, None, :], enc,
                             preferred_element_type=jnp.float32)[:, 0, :]  # (B, H)

        # ---- attention_vec = tanh(fc([context ; dec_output])) ----
        attn_vec = jnp.tanh(
            jnp.dot(context, w_fc_c, preferred_element_type=jnp.float32)
            + jnp.dot(h_new, w_fc_d, preferred_element_type=jnp.float32)
            + b_fc)                                                    # (B, H)

        # ---- greedy pick: argmax over logits (softmax dropped, monotonic) ----
        logits = (jnp.dot(attn_vec, w_out, preferred_element_type=jnp.float32)
                  + b_out)                                             # (B, V)
        lmax = jnp.max(logits, axis=-1, keepdims=True)
        best = jnp.max(jnp.where(logits == lmax, rev_iota_f, 0.0),
                       axis=-1, keepdims=True)                         # (B, 1)
        ids = (jnp.float32(V) - best).astype(jnp.int32)                # (B, 1) first argmax
        ids_acc = jnp.where(step_iota == t, ids, ids_acc)              # place into column t

        # ---- next-token embedding as one-hot @ ref_emb (MXU "gather") ----
        onehot = (vocab_iota == ids).astype(jnp.float32)               # (B, V)
        x_next = jnp.dot(onehot, ref_emb, preferred_element_type=jnp.float32)  # (B, E)
        return x_next, h_new, c_new, ids_acc

    ids_init = jnp.zeros((B, max_len), jnp.int32)
    _, _, _, ids_final = lax.fori_loop(
        0, max_len, step,
        (dec_in0_ref[...], h0_ref[...], c0_ref[...], ids_init))
    ids_ref[...] = ids_final


def run_greedy_decode(dec_in0, h0, c0, enc_bmh, mask, ref_emb, params, max_len):
    B, H = h0.shape
    V = params["out_w"].shape[1]
    kernel = functools.partial(greedy_decode_kernel, max_len=max_len, H=H, V=V)
    vmem = lambda: pl.BlockSpec(memory_space=pltpu.MemorySpace.VMEM)
    ids = pl.pallas_call(
        kernel,
        out_shape=jax.ShapeDtypeStruct((B, max_len), jnp.int32),
        in_specs=[vmem() for _ in range(14)],
        out_specs=vmem(),
    )(dec_in0, h0, c0, enc_bmh, mask, ref_emb,
      params["dec_w_ih"], params["dec_w_hh"], params["dec_b"],
      params["fc_w_c"], params["fc_w_d"], params["fc_b"],
      params["out_w"], params["out_b"])
    return ids


# ----------------------------- full translator -----------------------------

def nmt_translate(params, src_batch, mask, lengths, direction, max_len, max_ratio):
    """Greedy-decoding (beam_size=None) forward of NMT_Translator.

    src_batch: int32 (B, L)    mask: float32 (B, L)    lengths: int32 (B,)
    Returns (translated ids (B, max_len) int32,
             translated_mask (B, max_len) float32,
             translated_lengths (B,) int32)
    """
    if direction == "src2trg":
        in_emb, ref_emb = params["src_emb"], params["trg_emb"]
    elif direction == "trg2src":
        in_emb, ref_emb = params["trg_emb"], params["src_emb"]
    else:
        raise ValueError("Invalid direction! Can not use proper embedding!")

    B, L = src_batch.shape
    # pad batch to >= 8 sublanes for denser vector stores inside the kernels;
    # padded rows are discarded after decoding.
    B_pad = max(8, ((B + 7) // 8) * 8)
    pad = B_pad - B
    src_p = jnp.pad(src_batch, ((0, pad), (0, 0)), constant_values=PAD_ID)
    mask_p = jnp.pad(mask, ((0, pad), (0, 0)))

    start_ids = jnp.full((B_pad,), START_ID, dtype=jnp.int32)

    # embedding lookups (glue, plain JAX gather)
    x_emb = in_emb[src_p]                          # (B_pad, L, E)
    x_emb = jnp.transpose(x_emb, (1, 0, 2))        # time-major (L, B_pad, E)
    dec_in0 = ref_emb[start_ids]                   # (B_pad, E)

    enc_bmh, h_n, c_n = run_encoder(x_emb, params["enc_w_ih"],
                                    params["enc_w_hh"], params["enc_b"])

    ids_pad = run_greedy_decode(dec_in0, h_n, c_n, enc_bmh, mask_p, ref_emb,
                                params, max_len)   # (B_pad, max_len) int32
    trans_ids = ids_pad[:B]                        # (B, max_len)

    # host-side post-processing (emulates the vocab/string trimming on ids)
    trans_np = np.asarray(jax.device_get(trans_ids))
    lengths_np = np.asarray(jax.device_get(lengths)).tolist()
    cap = [min(int(l * max_ratio), max_len) for l in lengths_np]
    not_finished = set(range(B))
    translated_batch = [[] for _ in range(B)]
    for i in range(max_len):
        for idx in range(B):
            if idx in not_finished:
                w = int(trans_np[idx, i])
                if w == EOS_ID:
                    not_finished.discard(idx)
                elif w not in (START_ID, PAD_ID):
                    translated_batch[idx].append(w)
                if len(translated_batch[idx]) == cap[idx]:
                    not_finished.discard(idx)

    translated_lengths = [len(s) for s in translated_batch]
    translated_mask = np.stack(
        [np.concatenate([np.ones(l, np.float32), np.zeros(max_len - l, np.float32)])
         for l in translated_lengths], axis=0)
    padded = np.array([s + [PAD_ID] * (max_len - len(s)) for s in translated_batch],
                      dtype=np.int32)
    return (jnp.asarray(padded),
            jnp.asarray(translated_mask),
            jnp.asarray(np.array(translated_lengths, dtype=np.int32)))


# ------------------------------- param init --------------------------------

def init_params(key, V, E, H):
    ks = jax.random.split(key, 11)
    s = 0.1
    p = dict(
        src_emb=jax.random.normal(ks[0], (V, E)) * s,
        trg_emb=jax.random.normal(ks[1], (V, E)) * s,
        enc_w_ih=jax.random.normal(ks[2], (E, 4 * H)) * s,
        enc_w_hh=jax.random.normal(ks[3], (H, 4 * H)) * s,
        enc_b=jax.random.normal(ks[4], (1, 4 * H)) * s,     # = b_ih + b_hh pre-summed
        dec_w_ih=jax.random.normal(ks[5], (E, 4 * H)) * s,
        dec_w_hh=jax.random.normal(ks[6], (H, 4 * H)) * s,
        dec_b=jax.random.normal(ks[7], (1, 4 * H)) * s,     # = b_ih + b_hh pre-summed
        fc_w_c=jax.random.normal(ks[8], (H, H)) * s,        # fc weight, context half
        fc_w_d=jax.random.normal(ks[9], (H, H)) * s,        # fc weight, dec_output half
        fc_b=jnp.zeros((1, H)),
        out_w=jax.random.normal(ks[10], (H, V)) * s,
        out_b=jnp.zeros((1, V)),
    )
    return {k: v.astype(jnp.float32) for k, v in p.items()}


if __name__ == "__main__":
    B, L, E, H, V = 2, 8, 32, 32, 128
    MAX_LEN, MAX_RATIO = 6, 1.5

    key = jax.random.PRNGKey(0)
    pkey, dkey = jax.random.split(key)
    params = init_params(pkey, V, E, H)

    src_batch = jax.random.randint(dkey, (B, L), 4, V, dtype=jnp.int32)
    lengths = jnp.array([L, L - 3], dtype=jnp.int32)
    mask = (jnp.arange(L)[None, :] < lengths[:, None]).astype(jnp.float32)

    tb, tm, tl = nmt_translate(params, src_batch, mask, lengths,
                               "src2trg", MAX_LEN, MAX_RATIO)
    jax.block_until_ready((tb, tm, tl))
    assert tb.shape == (B, MAX_LEN) and tm.shape == (B, MAX_LEN) and tl.shape == (B,)
    print("KERNEL_OK")
</pallas_src>

<mosaic_0001>
module attributes {stable_mosaic.version = 11 : i64} {
  func.func @encoder_kernel(%arg0: memref<8x8x32xf32, #tpu.memory_space<vmem>>, %arg1: memref<32x128xf32, #tpu.memory_space<vmem>>, %arg2: memref<32x128xf32, #tpu.memory_space<vmem>>, %arg3: memref<1x128xf32, #tpu.memory_space<vmem>>, %arg4: memref<8x8x32xf32, #tpu.memory_space<vmem>>, %arg5: memref<8x32xf32, #tpu.memory_space<vmem>>, %arg6: memref<8x32xf32, #tpu.memory_space<vmem>>) attributes {dimension_semantics = [], scalar_prefetch = 0 : i64, scratch_operands = 0 : i64, tpu.core_type = #tpu.core_type<tc>} {
    %c0 = arith.constant 0 : index
    %c0_0 = arith.constant 0 : index
    %0 = vector.load %arg1[%c0, %c0_0] : memref<32x128xf32, #tpu.memory_space<vmem>>, vector<32x128xf32>
    %c0_1 = arith.constant 0 : index
    %c0_2 = arith.constant 0 : index
    %1 = vector.load %arg2[%c0_1, %c0_2] : memref<32x128xf32, #tpu.memory_space<vmem>>, vector<32x128xf32>
    %c0_3 = arith.constant 0 : index
    %c0_4 = arith.constant 0 : index
    %2 = vector.load %arg3[%c0_3, %c0_4] : memref<1x128xf32, #tpu.memory_space<vmem>>, vector<1x128xf32>
    %cst = arith.constant 0.000000e+00 : f32
    %3 = vector.broadcast %cst : f32 to vector<8x32xf32>
    %cst_5 = arith.constant 0.000000e+00 : f32
    %4 = vector.broadcast %cst_5 : f32 to vector<8x32xf32>
    %c0_i32 = arith.constant 0 : i32
    %5 = arith.index_cast %c0_i32 : i32 to index
    %c0_6 = arith.constant 0 : index
    %c0_7 = arith.constant 0 : index
    %6 = vector.load %arg0[%5, %c0_6, %c0_7] : memref<8x8x32xf32, #tpu.memory_space<vmem>>, vector<1x8x32xf32>
    %7 = vector.shape_cast %6 : vector<1x8x32xf32> to vector<8x32xf32>
    %cst_8 = arith.constant dense<0.000000e+00> : vector<8x128xf32>
    %8 = tpu.matmul %7, %0, %cst_8 {dimension_numbers = #tpu.dot_dimension_numbers<[1], [0], [0], [1], [0, 0, 1, 1], [], []>} : vector<8x32xf32>, vector<32x128xf32>, vector<8x128xf32> -> vector<8x128xf32>
    %cst_9 = arith.constant dense<0.000000e+00> : vector<8x128xf32>
    %9 = tpu.matmul %3, %1, %cst_9 {dimension_numbers = #tpu.dot_dimension_numbers<[1], [0], [0], [1], [0, 0, 1, 1], [], []>} : vector<8x32xf32>, vector<32x128xf32>, vector<8x128xf32> -> vector<8x128xf32>
    %10 = arith.addf %8, %9 : vector<8x128xf32>
    %11 = vector.broadcast %2 : vector<1x128xf32> to vector<8x128xf32>
    %12 = arith.addf %10, %11 : vector<8x128xf32>
    %13 = vector.extract_strided_slice %12 {offsets = [0, 0], sizes = [8, 32], strides = [1, 1]} : vector<8x128xf32> to vector<8x32xf32>
    %14 = arith.negf %13 : vector<8x32xf32>
    %15 = math.exp %14 : vector<8x32xf32>
    %cst_10 = arith.constant 1.000000e+00 : f32
    %16 = vector.broadcast %cst_10 : f32 to vector<8x32xf32>
    %17 = arith.addf %16, %15 : vector<8x32xf32>
    %18 = arith.divf %16, %17 : vector<8x32xf32>
    %19 = vector.extract_strided_slice %12 {offsets = [0, 32], sizes = [8, 32], strides = [1, 1]} : vector<8x128xf32> to vector<8x32xf32>
    %20 = arith.negf %19 : vector<8x32xf32>
    %21 = math.exp %20 : vector<8x32xf32>
    %cst_11 = arith.constant 1.000000e+00 : f32
    %22 = vector.broadcast %cst_11 : f32 to vector<8x32xf32>
    %23 = arith.addf %22, %21 : vector<8x32xf32>
    %24 = arith.divf %22, %23 : vector<8x32xf32>
    %25 = vector.extract_strided_slice %12 {offsets = [0, 64], sizes = [8, 32], strides = [1, 1]} : vector<8x128xf32> to vector<8x32xf32>
    %26 = math.tanh %25 : vector<8x32xf32>
    %27 = vector.extract_strided_slice %12 {offsets = [0, 96], sizes = [8, 32], strides = [1, 1]} : vector<8x128xf32> to vector<8x32xf32>
    %28 = arith.negf %27 : vector<8x32xf32>
    %29 = math.exp %28 : vector<8x32xf32>
    %cst_12 = arith.constant 1.000000e+00 : f32
    %30 = vector.broadcast %cst_12 : f32 to vector<8x32xf32>
    %31 = arith.addf %30, %29 : vector<8x32xf32>
    %32 = arith.divf %30, %31 : vector<8x32xf32>
    %33 = arith.mulf %24, %4 : vector<8x32xf32>
    %34 = arith.mulf %18, %26 : vector<8x32xf32>
    %35 = arith.addf %33, %34 : vector<8x32xf32>
    %36 = math.tanh %35 : vector<8x32xf32>
    %37 = arith.mulf %32, %36 : vector<8x32xf32>
    %38 = vector.shape_cast %37 : vector<8x32xf32> to vector<8x1x32xf32>
    %c0_13 = arith.constant 0 : index
    %39 = arith.index_cast %c0_i32 : i32 to index
    %c0_14 = arith.constant 0 : index
    %40 = vector.load %arg4[%c0_13, %39, %c0_14] : memref<8x8x32xf32, #tpu.memory_space<vmem>>, vector<8x1x32xf32>
    tpu.vector_store %arg4[%c0_13, %39, %c0_14], %38 {strides = array<i32>} : memref<8x8x32xf32, #tpu.memory_space<vmem>>, vector<8x1x32xf32>,
    %c1_i32 = arith.constant 1 : i32
    %41 = arith.index_cast %c1_i32 : i32 to index
    %c0_15 = arith.constant 0 : index
    %c0_16 = arith.constant 0 : index
    %42 = vector.load %arg0[%41, %c0_15, %c0_16] : memref<8x8x32xf32, #tpu.memory_space<vmem>>, vector<1x8x32xf32>
    %43 = vector.shape_cast %42 : vector<1x8x32xf32> to vector<8x32xf32>
    %cst_17 = arith.constant dense<0.000000e+00> : vector<8x128xf32>
    %44 = tpu.matmul %43, %0, %cst_17 {dimension_numbers = #tpu.dot_dimension_numbers<[1], [0], [0], [1], [0, 0, 1, 1], [], []>} : vector<8x32xf32>, vector<32x128xf32>, vector<8x128xf32> -> vector<8x128xf32>
    %cst_18 = arith.constant dense<0.000000e+00> : vector<8x128xf32>
    %45 = tpu.matmul %37, %1, %cst_18 {dimension_numbers = #tpu.dot_dimension_numbers<[1], [0], [0], [1], [0, 0, 1, 1], [], []>} : vector<8x32xf32>, vector<32x128xf32>, vector<8x128xf32> -> vector<8x128xf32>
    %46 = arith.addf %44, %45 : vector<8x128xf32>
    %47 = vector.broadcast %2 : vector<1x128xf32> to vector<8x128xf32>
    %48 = arith.addf %46, %47 : vector<8x128xf32>
    %49 = vector.extract_strided_slice %48 {offsets = [0, 0], sizes = [8, 32], strides = [1, 1]} : vector<8x128xf32> to vector<8x32xf32>
    %50 = arith.negf %49 : vector<8x32xf32>
    %51 = math.exp %50 : vector<8x32xf32>
    %cst_19 = arith.constant 1.000000e+00 : f32
    %52 = vector.broadcast %cst_19 : f32 to vector<8x32xf32>
    %53 = arith.addf %52, %51 : vector<8x32xf32>
    %54 = arith.divf %52, %53 : vector<8x32xf32>
    %55 = vector.extract_strided_slice %48 {offsets = [0, 32], sizes = [8, 32], strides = [1, 1]} : vector<8x128xf32> to vector<8x32xf32>
    %56 = arith.negf %55 : vector<8x32xf32>
    %57 = math.exp %56 : vector<8x32xf32>
    %cst_20 = arith.constant 1.000000e+00 : f32
    %58 = vector.broadcast %cst_20 : f32 to vector<8x32xf32>
    %59 = arith.addf %58, %57 : vector<8x32xf32>
    %60 = arith.divf %58, %59 : vector<8x32xf32>
    %61 = vector.extract_strided_slice %48 {offsets = [0, 64], sizes = [8, 32], strides = [1, 1]} : vector<8x128xf32> to vector<8x32xf32>
    %62 = math.tanh %61 : vector<8x32xf32>
    %63 = vector.extract_strided_slice %48 {offsets = [0, 96], sizes = [8, 32], strides = [1, 1]} : vector<8x128xf32> to vector<8x32xf32>
    %64 = arith.negf %63 : vector<8x32xf32>
    %65 = math.exp %64 : vector<8x32xf32>
    %cst_21 = arith.constant 1.000000e+00 : f32
    %66 = vector.broadcast %cst_21 : f32 to vector<8x32xf32>
    %67 = arith.addf %66, %65 : vector<8x32xf32>
    %68 = arith.divf %66, %67 : vector<8x32xf32>
    %69 = arith.mulf %60, %35 : vector<8x32xf32>
    %70 = arith.mulf %54, %62 : vector<8x32xf32>
    %71 = arith.addf %69, %70 : vector<8x32xf32>
    %72 = math.tanh %71 : vector<8x32xf32>
    %73 = arith.mulf %68, %72 : vector<8x32xf32>
    %74 = vector.shape_cast %73 : vector<8x32xf32> to vector<8x1x32xf32>
    %c0_22 = arith.constant 0 : index
    %75 = arith.index_cast %c1_i32 : i32 to index
    %c0_23 = arith.constant 0 : index
    %76 = vector.load %arg4[%c0_22, %75, %c0_23] : memref<8x8x32xf32, #tpu.memory_space<vmem>>, vector<8x1x32xf32>
    tpu.vector_store %arg4[%c0_22, %75, %c0_23], %74 {strides = array<i32>} : memref<8x8x32xf32, #tpu.memory_space<vmem>>, vector<8x1x32xf32>,
    %c2_i32 = arith.constant 2 : i32
    %77 = arith.index_cast %c2_i32 : i32 to index
    %c0_24 = arith.constant 0 : index
    %c0_25 = arith.constant 0 : index
    %78 = vector.load %arg0[%77, %c0_24, %c0_25] : memref<8x8x32xf32, #tpu.memory_space<vmem>>, vector<1x8x32xf32>
    %79 = vector.shape_cast %78 : vector<1x8x32xf32> to vector<8x32xf32>
    %cst_26 = arith.constant dense<0.000000e+00> : vector<8x128xf32>
    %80 = tpu.matmul %79, %0, %cst_26 {dimension_numbers = #tpu.dot_dimension_numbers<[1], [0], [0], [1], [0, 0, 1, 1], [], []>} : vector<8x32xf32>, vector<32x128xf32>, vector<8x128xf32> -> vector<8x128xf32>
    %cst_27 = arith.constant dense<0.000000e+00> : vector<8x128xf32>
    %81 = tpu.matmul %73, %1, %cst_27 {dimension_numbers = #tpu.dot_dimension_numbers<[1], [0], [0], [1], [0, 0, 1, 1], [], []>} : vector<8x32xf32>, vector<32x128xf32>, vector<8x128xf32> -> vector<8x128xf32>
    %82 = arith.addf %80, %81 : vector<8x128xf32>
    %83 = vector.broadcast %2 : vector<1x128xf32> to vector<8x128xf32>
    %84 = arith.addf %82, %83 : vector<8x128xf32>
    %85 = vector.extract_strided_slice %84 {offsets = [0, 0], sizes = [8, 32], strides = [1, 1]} : vector<8x128xf32> to vector<8x32xf32>
    %86 = arith.negf %85 : vector<8x32xf32>
    %87 = math.exp %86 : vector<8x32xf32>
    %cst_28 = arith.constant 1.000000e+00 : f32
    %88 = vector.broadcast %cst_28 : f32 to vector<8x32xf32>
    %89 = arith.addf %88, %87 : vector<8x32xf32>
    %90 = arith.divf %88, %89 : vector<8x32xf32>
    %91 = vector.extract_strided_slice %84 {offsets = [0, 32], sizes = [8, 32], strides = [1, 1]} : vector<8x128xf32> to vector<8x32xf32>
    %92 = arith.negf %91 : vector<8x32xf32>
    %93 = math.exp %92 : vector<8x32xf32>
    %cst_29 = arith.constant 1.000000e+00 : f32
    %94 = vector.broadcast %cst_29 : f32 to vector<8x32xf32>
    %95 = arith.addf %94, %93 : vector<8x32xf32>
    %96 = arith.divf %94, %95 : vector<8x32xf32>
    %97 = vector.extract_strided_slice %84 {offsets = [0, 64], sizes = [8, 32], strides = [1, 1]} : vector<8x128xf32> to vector<8x32xf32>
    %98 = math.tanh %97 : vector<8x32xf32>
    %99 = vector.extract_strided_slice %84 {offsets = [0, 96], sizes = [8, 32], strides = [1, 1]} : vector<8x128xf32> to vector<8x32xf32>
    %100 = arith.negf %99 : vector<8x32xf32>
    %101 = math.exp %100 : vector<8x32xf32>
    %cst_30 = arith.constant 1.000000e+00 : f32
    %102 = vector.broadcast %cst_30 : f32 to vector<8x32xf32>
    %103 = arith.addf %102, %101 : vector<8x32xf32>
    %104 = arith.divf %102, %103 : vector<8x32xf32>
    %105 = arith.mulf %96, %71 : vector<8x32xf32>
    %106 = arith.mulf %90, %98 : vector<8x32xf32>
    %107 = arith.addf %105, %106 : vector<8x32xf32>
    %108 = math.tanh %107 : vector<8x32xf32>
    %109 = arith.mulf %104, %108 : vector<8x32xf32>
    %110 = vector.shape_cast %109 : vector<8x32xf32> to vector<8x1x32xf32>
    %c0_31 = arith.constant 0 : index
    %111 = arith.index_cast %c2_i32 : i32 to index
    %c0_32 = arith.constant 0 : index
    %112 = vector.load %arg4[%c0_31, %111, %c0_32] : memref<8x8x32xf32, #tpu.memory_space<vmem>>, vector<8x1x32xf32>
    tpu.vector_store %arg4[%c0_31, %111, %c0_32], %110 {strides = array<i32>} : memref<8x8x32xf32, #tpu.memory_space<vmem>>, vector<8x1x32xf32>,
    %c3_i32 = arith.constant 3 : i32
    %113 = arith.index_cast %c3_i32 : i32 to index
    %c0_33 = arith.constant 0 : index
    %c0_34 = arith.constant 0 : index
    %114 = vector.load %arg0[%113, %c0_33, %c0_34] : memref<8x8x32xf32, #tpu.memory_space<vmem>>, vector<1x8x32xf32>
    %115 = vector.shape_cast %114 : vector<1x8x32xf32> to vector<8x32xf32>
    %cst_35 = arith.constant dense<0.000000e+00> : vector<8x128xf32>
    %116 = tpu.matmul %115, %0, %cst_35 {dimension_numbers = #tpu.dot_dimension_numbers<[1], [0], [0], [1], [0, 0, 1, 1], [], []>} : vector<8x32xf32>, vector<32x128xf32>, vector<8x128xf32> -> vector<8x128xf32>
    %cst_36 = arith.constant dense<0.000000e+00> : vector<8x128xf32>
    %117 = tpu.matmul %109, %1, %cst_36 {dimension_numbers = #tpu.dot_dimension_numbers<[1], [0], [0], [1], [0, 0, 1, 1], [], []>} : vector<8x32xf32>, vector<32x128xf32>, vector<8x128xf32> -> vector<8x128xf32>
    %118 = arith.addf %116, %117 : vector<8x128xf32>
    %119 = vector.broadcast %2 : vector<1x128xf32> to vector<8x128xf32>
    %120 = arith.addf %118, %119 : vector<8x128xf32>
    %121 = vector.extract_strided_slice %120 {offsets = [0, 0], sizes = [8, 32], strides = [1, 1]} : vector<8x128xf32> to vector<8x32xf32>
    %122 = arith.negf %121 : vector<8x32xf32>
    %123 = math.exp %122 : vector<8x32xf32>
    %cst_37 = arith.constant 1.000000e+00 : f32
    %124 = vector.broadcast %cst_37 : f32 to vector<8x32xf32>
    %125 = arith.addf %124, %123 : vector<8x32xf32>
    %126 = arith.divf %124, %125 : vector<8x32xf32>
    %127 = vector.extract_strided_slice %120 {offsets = [0, 32], sizes = [8, 32], strides = [1, 1]} : vector<8x128xf32> to vector<8x32xf32>
    %128 = arith.negf %127 : vector<8x32xf32>
    %129 = math.exp %128 : vector<8x32xf32>
    %cst_38 = arith.constant 1.000000e+00 : f32
    %130 = vector.broadcast %cst_38 : f32 to vector<8x32xf32>
    %131 = arith.addf %130, %129 : vector<8x32xf32>
    %132 = arith.divf %130, %131 : vector<8x32xf32>
    %133 = vector.extract_strided_slice %120 {offsets = [0, 64], sizes = [8, 32], strides = [1, 1]} : vector<8x128xf32> to vector<8x32xf32>
    %134 = math.tanh %133 : vector<8x32xf32>
    %135 = vector.extract_strided_slice %120 {offsets = [0, 96], sizes = [8, 32], strides = [1, 1]} : vector<8x128xf32> to vector<8x32xf32>
    %136 = arith.negf %135 : vector<8x32xf32>
    %137 = math.exp %136 : vector<8x32xf32>
    %cst_39 = arith.constant 1.000000e+00 : f32
    %138 = vector.broadcast %cst_39 : f32 to vector<8x32xf32>
    %139 = arith.addf %138, %137 : vector<8x32xf32>
    %140 = arith.divf %138, %139 : vector<8x32xf32>
    %141 = arith.mulf %132, %107 : vector<8x32xf32>
    %142 = arith.mulf %126, %134 : vector<8x32xf32>
    %143 = arith.addf %141, %142 : vector<8x32xf32>
    %144 = math.tanh %143 : vector<8x32xf32>
    %145 = arith.mulf %140, %144 : vector<8x32xf32>
    %146 = vector.shape_cast %145 : vector<8x32xf32> to vector<8x1x32xf32>
    %c0_40 = arith.constant 0 : index
    %147 = arith.index_cast %c3_i32 : i32 to index
    %c0_41 = arith.constant 0 : index
    %148 = vector.load %arg4[%c0_40, %147, %c0_41] : memref<8x8x32xf32, #tpu.memory_space<vmem>>, vector<8x1x32xf32>
    tpu.vector_store %arg4[%c0_40, %147, %c0_41], %146 {strides = array<i32>} : memref<8x8x32xf32, #tpu.memory_space<vmem>>, vector<8x1x32xf32>,
    %c4_i32 = arith.constant 4 : i32
    %149 = arith.index_cast %c4_i32 : i32 to index
    %c0_42 = arith.constant 0 : index
    %c0_43 = arith.constant 0 : index
    %150 = vector.load %arg0[%149, %c0_42, %c0_43] : memref<8x8x32xf32, #tpu.memory_space<vmem>>, vector<1x8x32xf32>
    %151 = vector.shape_cast %150 : vector<1x8x32xf32> to vector<8x32xf32>
    %cst_44 = arith.constant dense<0.000000e+00> : vector<8x128xf32>
    %152 = tpu.matmul %151, %0, %cst_44 {dimension_numbers = #tpu.dot_dimension_numbers<[1], [0], [0], [1], [0, 0, 1, 1], [], []>} : vector<8x32xf32>, vector<32x128xf32>, vector<8x128xf32> -> vector<8x128xf32>
    %cst_45 = arith.constant dense<0.000000e+00> : vector<8x128xf32>
    %153 = tpu.matmul %145, %1, %cst_45 {dimension_numbers = #tpu.dot_dimension_numbers<[1], [0], [0], [1], [0, 0, 1, 1], [], []>} : vector<8x32xf32>, vector<32x128xf32>, vector<8x128xf32> -> vector<8x128xf32>
    %154 = arith.addf %152, %153 : vector<8x128xf32>
    %155 = vector.broadcast %2 : vector<1x128xf32> to vector<8x128xf32>
    %156 = arith.addf %154, %155 : vector<8x128xf32>
    %157 = vector.extract_strided_slice %156 {offsets = [0, 0], sizes = [8, 32], strides = [1, 1]} : vector<8x128xf32> to vector<8x32xf32>
    %158 = arith.negf %157 : vector<8x32xf32>
    %159 = math.exp %158 : vector<8x32xf32>
    %cst_46 = arith.constant 1.000000e+00 : f32
    %160 = vector.broadcast %cst_46 : f32 to vector<8x32xf32>
    %161 = arith.addf %160, %159 : vector<8x32xf32>
    %162 = arith.divf %160, %161 : vector<8x32xf32>
    %163 = vector.extract_strided_slice %156 {offsets = [0, 32], sizes = [8, 32], strides = [1, 1]} : vector<8x128xf32> to vector<8x32xf32>
    %164 = arith.negf %163 : vector<8x32xf32>
    %165 = math.exp %164 : vector<8x32xf32>
    %cst_47 = arith.constant 1.000000e+00 : f32
    %166 = vector.broadcast %cst_47 : f32 to vector<8x32xf32>
    %167 = arith.addf %166, %165 : vector<8x32xf32>
    %168 = arith.divf %166, %167 : vector<8x32xf32>
    %169 = vector.extract_strided_slice %156 {offsets = [0, 64], sizes = [8, 32], strides = [1, 1]} : vector<8x128xf32> to vector<8x32xf32>
    %170 = math.tanh %169 : vector<8x32xf32>
    %171 = vector.extract_strided_slice %156 {offsets = [0, 96], sizes = [8, 32], strides = [1, 1]} : vector<8x128xf32> to vector<8x32xf32>
    %172 = arith.negf %171 : vector<8x32xf32>
    %173 = math.exp %172 : vector<8x32xf32>
    %cst_48 = arith.constant 1.000000e+00 : f32
    %174 = vector.broadcast %cst_48 : f32 to vector<8x32xf32>
    %175 = arith.addf %174, %173 : vector<8x32xf32>
    %176 = arith.divf %174, %175 : vector<8x32xf32>
    %177 = arith.mulf %168, %143 : vector<8x32xf32>
    %178 = arith.mulf %162, %170 : vector<8x32xf32>
    %179 = arith.addf %177, %178 : vector<8x32xf32>
    %180 = math.tanh %179 : vector<8x32xf32>
    %181 = arith.mulf %176, %180 : vector<8x32xf32>
    %182 = vector.shape_cast %181 : vector<8x32xf32> to vector<8x1x32xf32>
    %c0_49 = arith.constant 0 : index
    %183 = arith.index_cast %c4_i32 : i32 to index
    %c0_50 = arith.constant 0 : index
    %184 = vector.load %arg4[%c0_49, %183, %c0_50] : memref<8x8x32xf32, #tpu.memory_space<vmem>>, vector<8x1x32xf32>
    tpu.vector_store %arg4[%c0_49, %183, %c0_50], %182 {strides = array<i32>} : memref<8x8x32xf32, #tpu.memory_space<vmem>>, vector<8x1x32xf32>,
    %c5_i32 = arith.constant 5 : i32
    %185 = arith.index_cast %c5_i32 : i32 to index
    %c0_51 = arith.constant 0 : index
    %c0_52 = arith.constant 0 : index
    %186 = vector.load %arg0[%185, %c0_51, %c0_52] : memref<8x8x32xf32, #tpu.memory_space<vmem>>, vector<1x8x32xf32>
    %187 = vector.shape_cast %186 : vector<1x8x32xf32> to vector<8x32xf32>
    %cst_53 = arith.constant dense<0.000000e+00> : vector<8x128xf32>
    %188 = tpu.matmul %187, %0, %cst_53 {dimension_numbers = #tpu.dot_dimension_numbers<[1], [0], [0], [1], [0, 0, 1, 1], [], []>} : vector<8x32xf32>, vector<32x128xf32>, vector<8x128xf32> -> vector<8x128xf32>
    %cst_54 = arith.constant dense<0.000000e+00> : vector<8x128xf32>
    %189 = tpu.matmul %181, %1, %cst_54 {dimension_numbers = #tpu.dot_dimension_numbers<[1], [0], [0], [1], [0, 0, 1, 1], [], []>} : vector<8x32xf32>, vector<32x128xf32>, vector<8x128xf32> -> vector<8x128xf32>
    %190 = arith.addf %188, %189 : vector<8x128xf32>
    %191 = vector.broadcast %2 : vector<1x128xf32> to vector<8x128xf32>
    %192 = arith.addf %190, %191 : vector<8x128xf32>
    %193 = vector.extract_strided_slice %192 {offsets = [0, 0], sizes = [8, 32], strides = [1, 1]} : vector<8x128xf32> to vector<8x32xf32>
    %194 = arith.negf %193 : vector<8x32xf32>
    %195 = math.exp %194 : vector<8x32xf32>
    %cst_55 = arith.constant 1.000000e+00 : f32
    %196 = vector.broadcast %cst_55 : f32 to vector<8x32xf32>
    %197 = arith.addf %196, %195 : vector<8x32xf32>
    %198 = arith.divf %196, %197 : vector<8x32xf32>
    %199 = vector.extract_strided_slice %192 {offsets = [0, 32], sizes = [8, 32], strides = [1, 1]} : vector<8x128xf32> to vector<8x32xf32>
    %200 = arith.negf %199 : vector<8x32xf32>
    %201 = math.exp %200 : vector<8x32xf32>
    %cst_56 = arith.constant 1.000000e+00 : f32
    %202 = vector.broadcast %cst_56 : f32 to vector<8x32xf32>
    %203 = arith.addf %202, %201 : vector<8x32xf32>
    %204 = arith.divf %202, %203 : vector<8x32xf32>
    %205 = vector.extract_strided_slice %192 {offsets = [0, 64], sizes = [8, 32], strides = [1, 1]} : vector<8x128xf32> to vector<8x32xf32>
    %206 = math.tanh %205 : vector<8x32xf32>
    %207 = vector.extract_strided_slice %192 {offsets = [0, 96], sizes = [8, 32], strides = [1, 1]} : vector<8x128xf32> to vector<8x32xf32>
    %208 = arith.negf %207 : vector<8x32xf32>
    %209 = math.exp %208 : vector<8x32xf32>
    %cst_57 = arith.constant 1.000000e+00 : f32
    %210 = vector.broadcast %cst_57 : f32 to vector<8x32xf32>
    %211 = arith.addf %210, %209 : vector<8x32xf32>
    %212 = arith.divf %210, %211 : vector<8x32xf32>
    %213 = arith.mulf %204, %179 : vector<8x32xf32>
    %214 = arith.mulf %198, %206 : vector<8x32xf32>
    %215 = arith.addf %213, %214 : vector<8x32xf32>
    %216 = math.tanh %215 : vector<8x32xf32>
    %217 = arith.mulf %212, %216 : vector<8x32xf32>
    %218 = vector.shape_cast %217 : vector<8x32xf32> to vector<8x1x32xf32>
    %c0_58 = arith.constant 0 : index
    %219 = arith.index_cast %c5_i32 : i32 to index
    %c0_59 = arith.constant 0 : index
    %220 = vector.load %arg4[%c0_58, %219, %c0_59] : memref<8x8x32xf32, #tpu.memory_space<vmem>>, vector<8x1x32xf32>
    tpu.vector_store %arg4[%c0_58, %219, %c0_59], %218 {strides = array<i32>} : memref<8x8x32xf32, #tpu.memory_space<vmem>>, vector<8x1x32xf32>,
    %c6_i32 = arith.constant 6 : i32
    %221 = arith.index_cast %c6_i32 : i32 to index
    %c0_60 = arith.constant 0 : index
    %c0_61 = arith.constant 0 : index
    %222 = vector.load %arg0[%221, %c0_60, %c0_61] : memref<8x8x32xf32, #tpu.memory_space<vmem>>, vector<1x8x32xf32>
    %223 = vector.shape_cast %222 : vector<1x8x32xf32> to vector<8x32xf32>
    %cst_62 = arith.constant dense<0.000000e+00> : vector<8x128xf32>
    %224 = tpu.matmul %223, %0, %cst_62 {dimension_numbers = #tpu.dot_dimension_numbers<[1], [0], [0], [1], [0, 0, 1, 1], [], []>} : vector<8x32xf32>, vector<32x128xf32>, vector<8x128xf32> -> vector<8x128xf32>
    %cst_63 = arith.constant dense<0.000000e+00> : vector<8x128xf32>
    %225 = tpu.matmul %217, %1, %cst_63 {dimension_numbers = #tpu.dot_dimension_numbers<[1], [0], [0], [1], [0, 0, 1, 1], [], []>} : vector<8x32xf32>, vector<32x128xf32>, vector<8x128xf32> -> vector<8x128xf32>
    %226 = arith.addf %224, %225 : vector<8x128xf32>
    %227 = vector.broadcast %2 : vector<1x128xf32> to vector<8x128xf32>
    %228 = arith.addf %226, %227 : vector<8x128xf32>
    %229 = vector.extract_strided_slice %228 {offsets = [0, 0], sizes = [8, 32], strides = [1, 1]} : vector<8x128xf32> to vector<8x32xf32>
    %230 = arith.negf %229 : vector<8x32xf32>
    %231 = math.exp %230 : vector<8x32xf32>
    %cst_64 = arith.constant 1.000000e+00 : f32
    %232 = vector.broadcast %cst_64 : f32 to vector<8x32xf32>
    %233 = arith.addf %232, %231 : vector<8x32xf32>
    %234 = arith.divf %232, %233 : vector<8x32xf32>
    %235 = vector.extract_strided_slice %228 {offsets = [0, 32], sizes = [8, 32], strides = [1, 1]} : vector<8x128xf32> to vector<8x32xf32>
    %236 = arith.negf %235 : vector<8x32xf32>
    %237 = math.exp %236 : vector<8x32xf32>
    %cst_65 = arith.constant 1.000000e+00 : f32
    %238 = vector.broadcast %cst_65 : f32 to vector<8x32xf32>
    %239 = arith.addf %238, %237 : vector<8x32xf32>
    %240 = arith.divf %238, %239 : vector<8x32xf32>
    %241 = vector.extract_strided_slice %228 {offsets = [0, 64], sizes = [8, 32], strides = [1, 1]} : vector<8x128xf32> to vector<8x32xf32>
    %242 = math.tanh %241 : vector<8x32xf32>
    %243 = vector.extract_strided_slice %228 {offsets = [0, 96], sizes = [8, 32], strides = [1, 1]} : vector<8x128xf32> to vector<8x32xf32>
    %244 = arith.negf %243 : vector<8x32xf32>
    %245 = math.exp %244 : vector<8x32xf32>
    %cst_66 = arith.constant 1.000000e+00 : f32
    %246 = vector.broadcast %cst_66 : f32 to vector<8x32xf32>
    %247 = arith.addf %246, %245 : vector<8x32xf32>
    %248 = arith.divf %246, %247 : vector<8x32xf32>
    %249 = arith.mulf %240, %215 : vector<8x32xf32>
    %250 = arith.mulf %234, %242 : vector<8x32xf32>
    %251 = arith.addf %249, %250 : vector<8x32xf32>
    %252 = math.tanh %251 : vector<8x32xf32>
    %253 = arith.mulf %248, %252 : vector<8x32xf32>
    %254 = vector.shape_cast %253 : vector<8x32xf32> to vector<8x1x32xf32>
    %c0_67 = arith.constant 0 : index
    %255 = arith.index_cast %c6_i32 : i32 to index
    %c0_68 = arith.constant 0 : index
    %256 = vector.load %arg4[%c0_67, %255, %c0_68] : memref<8x8x32xf32, #tpu.memory_space<vmem>>, vector<8x1x32xf32>
    tpu.vector_store %arg4[%c0_67, %255, %c0_68], %254 {strides = array<i32>} : memref<8x8x32xf32, #tpu.memory_space<vmem>>, vector<8x1x32xf32>,
    %c7_i32 = arith.constant 7 : i32
    %257 = arith.index_cast %c7_i32 : i32 to index
    %c0_69 = arith.constant 0 : index
    %c0_70 = arith.constant 0 : index
    %258 = vector.load %arg0[%257, %c0_69, %c0_70] : memref<8x8x32xf32, #tpu.memory_space<vmem>>, vector<1x8x32xf32>
    %259 = vector.shape_cast %258 : vector<1x8x32xf32> to vector<8x32xf32>
    %cst_71 = arith.constant dense<0.000000e+00> : vector<8x128xf32>
    %260 = tpu.matmul %259, %0, %cst_71 {dimension_numbers = #tpu.dot_dimension_numbers<[1], [0], [0], [1], [0, 0, 1, 1], [], []>} : vector<8x32xf32>, vector<32x128xf32>, vector<8x128xf32> -> vector<8x128xf32>
    %cst_72 = arith.constant dense<0.000000e+00> : vector<8x128xf32>
    %261 = tpu.matmul %253, %1, %cst_72 {dimension_numbers = #tpu.dot_dimension_numbers<[1], [0], [0], [1], [0, 0, 1, 1], [], []>} : vector<8x32xf32>, vector<32x128xf32>, vector<8x128xf32> -> vector<8x128xf32>
    %262 = arith.addf %260, %261 : vector<8x128xf32>
    %263 = vector.broadcast %2 : vector<1x128xf32> to vector<8x128xf32>
    %264 = arith.addf %262, %263 : vector<8x128xf32>
    %265 = vector.extract_strided_slice %264 {offsets = [0, 0], sizes = [8, 32], strides = [1, 1]} : vector<8x128xf32> to vector<8x32xf32>
    %266 = arith.negf %265 : vector<8x32xf32>
    %267 = math.exp %266 : vector<8x32xf32>
    %cst_73 = arith.constant 1.000000e+00 : f32
    %268 = vector.broadcast %cst_73 : f32 to vector<8x32xf32>
    %269 = arith.addf %268, %267 : vector<8x32xf32>
    %270 = arith.divf %268, %269 : vector<8x32xf32>
    %271 = vector.extract_strided_slice %264 {offsets = [0, 32], sizes = [8, 32], strides = [1, 1]} : vector<8x128xf32> to vector<8x32xf32>
    %272 = arith.negf %271 : vector<8x32xf32>
    %273 = math.exp %272 : vector<8x32xf32>
    %cst_74 = arith.constant 1.000000e+00 : f32
    %274 = vector.broadcast %cst_74 : f32 to vector<8x32xf32>
    %275 = arith.addf %274, %273 : vector<8x32xf32>
    %276 = arith.divf %274, %275 : vector<8x32xf32>
    %277 = vector.extract_strided_slice %264 {offsets = [0, 64], sizes = [8, 32], strides = [1, 1]} : vector<8x128xf32> to vector<8x32xf32>
    %278 = math.tanh %277 : vector<8x32xf32>
    %279 = vector.extract_strided_slice %264 {offsets = [0, 96], sizes = [8, 32], strides = [1, 1]} : vector<8x128xf32> to vector<8x32xf32>
    %280 = arith.negf %279 : vector<8x32xf32>
    %281 = math.exp %280 : vector<8x32xf32>
    %cst_75 = arith.constant 1.000000e+00 : f32
    %282 = vector.broadcast %cst_75 : f32 to vector<8x32xf32>
    %283 = arith.addf %282, %281 : vector<8x32xf32>
    %284 = arith.divf %282, %283 : vector<8x32xf32>
    %285 = arith.mulf %276, %251 : vector<8x32xf32>
    %286 = arith.mulf %270, %278 : vector<8x32xf32>
    %287 = arith.addf %285, %286 : vector<8x32xf32>
    %288 = math.tanh %287 : vector<8x32xf32>
    %289 = arith.mulf %284, %288 : vector<8x32xf32>
    %290 = vector.shape_cast %289 : vector<8x32xf32> to vector<8x1x32xf32>
    %c0_76 = arith.constant 0 : index
    %291 = arith.index_cast %c7_i32 : i32 to index
    %c0_77 = arith.constant 0 : index
    %292 = vector.load %arg4[%c0_76, %291, %c0_77] : memref<8x8x32xf32, #tpu.memory_space<vmem>>, vector<8x1x32xf32>
    tpu.vector_store %arg4[%c0_76, %291, %c0_77], %290 {strides = array<i32>} : memref<8x8x32xf32, #tpu.memory_space<vmem>>, vector<8x1x32xf32>,
    %c8_i32 = arith.constant 8 : i32
    %c0_78 = arith.constant 0 : index
    %c0_79 = arith.constant 0 : index
    %293 = vector.load %arg5[%c0_78, %c0_79] : memref<8x32xf32, #tpu.memory_space<vmem>>, vector<8x32xf32>
    tpu.vector_store %arg5[%c0_78, %c0_79], %289 {strides = array<i32>} : memref<8x32xf32, #tpu.memory_space<vmem>>, vector<8x32xf32>,
    %c0_80 = arith.constant 0 : index
    %c0_81 = arith.constant 0 : index
    %294 = vector.load %arg6[%c0_80, %c0_81] : memref<8x32xf32, #tpu.memory_space<vmem>>, vector<8x32xf32>
    tpu.vector_store %arg6[%c0_80, %c0_81], %287 {strides = array<i32>} : memref<8x32xf32, #tpu.memory_space<vmem>>, vector<8x32xf32>,
    return
  }
}

</mosaic_0001>

<bundles_post_ra>
// kernel: tpu_custom_call.1
= control target key start
LH: loop header
LB: loop body
LE: loop exit
PB: predicated region body
PF: predicated region fallthrough
CT: control target
= control target key end

     0   :  { %12 = vsyncpa [#allocation3], 0  ;;  %s3722_s0 = inlined_call_operand.hbm [shape: f32[8,8,32], index: 0, kind: input, shape index: {}]   ;;  %s3723_s1 = inlined_call_operand.hbm [shape: f32[32,128], index: 1, kind: input, shape index: {}]   ;;  %s3724_s2 = inlined_call_operand.hbm [shape: f32[32,128], index: 2, kind: input, shape index: {}]   ;;  %s3725_s3 = inlined_call_operand.vmem [shape: f32[1,128], index: 3, kind: input, shape index: {}]   ;;  %s3726_s4 = inlined_call_operand.hbm [shape: f32[8,8,32], index: 4, kind: output, shape index: {0}]   ;;  %s3727_s5 = inlined_call_operand.hbm [shape: f32[8,32], index: 5, kind: output, shape index: {1}]   ;;  %s3728_s6 = inlined_call_operand.hbm [shape: f32[8,32], index: 6, kind: output, shape index: {2}]  }
   0x1   :  { %13 = vsyncpa [#allocation6], 0 }
   0x2   :  { %14 = vsyncpa [#allocation4], 0 }
   0x3   :  { %15 = vsyncpa [#allocation10], 0  ;;  %s3031_s21 = smov [#allocation5]   ;;  %s3032_s23 = smov [#allocation2]  }
   0x4   :  { %s33_s22 = sshll.u32 %s3031_s21, 4  ;;  %s21_s24 = sshll.u32 %s3032_s23, 4  ;;  %s34_s22 = int_to_ptr.vmem [resolvable:$true] %s33_s22  ;;  %s3081_s24 = int_to_ptr.vmem [resolvable:$true] %s21_s24 }
   0x5   :  { %s2891_s27 = scalar_lea.hbm %s3723_s1, 512 }
   0x6   :  { %p2892_p0 = scmp.ne.s32.totalorder %s3723_s1, %s2891_s27  ;;  %p2895_p1 = scmp.lt.u32.totalorder %s2891_s27, %s3723_s1 }
   0x8   :  { %p2897_p2 = pnand %p2895_p1, %p2892_p0 }
   0xa   :  { %2900 = shalt.err (!%p2897_p2)
}
   0xb   :  { %s2901_s8 = scalar_lea.vmem %s34_s22, 512  ;;  %p2906_p4 = scmp.lt.s32.totalorder %s34_s22, %s34_s22 }
   0xc   :  { %p2902_p3 = scmp.ne.s32.totalorder %s34_s22, %s2901_s8  ;;  %p2907_p5 = scmp.lt.s32.totalorder %s2901_s8, %s2901_s8 }
   0xe   :  { %p2908_p6 = por %p2907_p5, %p2906_p4 }
  0x10   :  { %p2909_p7 = pnand %p2908_p6, %p2902_p3 }
  0x12   :  { %2912 = shalt.err (!%p2909_p7)
}
  0x13   :  { %s3033_s9 = smov 128   ;;  %s3034_s10 = smov 8  }
  0x14   :  { %39 = dma.hbm_to_vmem [thread:$0]  %s3723_s1, 512, %s34_s22, [#allocation6], %s3033_s9, %s3033_s9, %s3034_s10  }
  0x15   :  { %s2913_s15 = scalar_lea.hbm %s3722_s0, 1024 }
  0x16   :  { %p2914_p8 = scmp.ne.s32.totalorder %s3722_s0, %s2913_s15  ;;  %p2917_p9 = scmp.lt.u32.totalorder %s2913_s15, %s3722_s0 }
  0x18   :  { %p2919_p10 = pnand %p2917_p9, %p2914_p8 }
  0x1a   :  { %2922 = shalt.err (!%p2919_p10)
}
  0x1b   :  { %s2923_s20 = scalar_lea.vmem %s3081_s24, 1024  ;;  %p2928_p12 = scmp.lt.s32.totalorder %s3081_s24, %s3081_s24 }
  0x1c   :  { %p2924_p11 = scmp.ne.s32.totalorder %s3081_s24, %s2923_s20  ;;  %p2929_p13 = scmp.lt.s32.totalorder %s2923_s20, %s2923_s20 }
  0x1e   :  { %p2930_p0 = por %p2929_p13, %p2928_p12 }
  0x20   :  { %p2931_p1 = pnand %p2930_p0, %p2924_p11 }
  0x22   :  { %2934 = shalt.err (!%p2931_p1)
}
  0x23   :  { %27 = dma.hbm_to_vmem [thread:$0]  %s3722_s0, 1024, %s3081_s24, [#allocation3], %s3033_s9, %s3033_s9, %s3034_s10  }
  0x24   :  { %s3035_s22 = smov [#allocation7]   ;;  %s2935_s27 = scalar_lea.hbm %s3724_s2, 512 }
  0x25   :  { %s45_s23 = sshll.u32 %s3035_s22, 4  ;;  %p2936_p2 = scmp.ne.s32.totalorder %s3724_s2, %s2935_s27  ;;  %s46_s23 = int_to_ptr.vmem [resolvable:$true] %s45_s23 }
  0x26   :  { %p2939_p3 = scmp.lt.u32.totalorder %s2935_s27, %s3724_s2 }
  0x28   :  { %p2941_p4 = pnand %p2939_p3, %p2936_p2 }
  0x2a   :  { %2944 = shalt.err (!%p2941_p4)
}
  0x2b   :  { %s2945_s8 = scalar_lea.vmem %s46_s23, 512  ;;  %p2950_p6 = scmp.lt.s32.totalorder %s46_s23, %s46_s23 }
  0x2c   :  { %p2946_p5 = scmp.ne.s32.totalorder %s46_s23, %s2945_s8  ;;  %p2951_p7 = scmp.lt.s32.totalorder %s2945_s8, %s2945_s8 }
  0x2e   :  { %p2952_p8 = por %p2951_p7, %p2950_p6 }
  0x30   :  { %p2953_p9 = pnand %p2952_p8, %p2946_p5 }
  0x32   :  { %2956 = shalt.err (!%p2953_p9)
}
  0x33   :  { %51 = dma.hbm_to_vmem [thread:$0]  %s3724_s2, 512, %s46_s23, [#allocation6], %s3033_s9, %s3033_s9, %s3034_s10  }
  0x34   :  { %3023 = dma.done.wait [#allocation3], 1024  }
  0x35   :  { %3024 = vsyncadd [#allocation3], 4294966272 }
  0x36   :  { %3025 = dma.done.wait [#allocation6], 1024  }
  0x37   :  { %3026 = vsyncadd [#allocation6], 4294966272  ;;  %v3036_v0 = vmov 0.0|0.0   ;;  %vm3037_vm0 = vmmov 0   ;;  %v3038_v1 = vmov 0.0   ;;  %v67_v2 = vld [vmem:[#allocation7] sm:$0xff] }
  0x38   :  { %2716 = vmatprep.subr.bf16.mxu0 %v3036_v0  ;;  %2722 = vmatprep.subr.bf16.mxu1 %v3036_v0  ;;  %v68_v3 = vld [vmem:[#allocation7 + $0x8] sm:$0xff]  ;;  %v63_v4 = vld [vmem:[#allocation5] sm:$0xff]  ;;  %v69_v7 = vld [vmem:[#allocation7 + $0x10] sm:$0xff]  ;;  %vm73_vm1 = vcmask 261120   ;;  %s3039_s12 = smov 64   ;;  %vm357_vm2 = vcmask 253952  }
  0x39   :  { %2548 = vmatprep.mubr.msk.f32.mxu0 %vm3037_vm0, %v3038_v1  ;;  %2559 = vmatprep.mubr.msk.f32.mxu1 %vm3037_vm0, %v3038_v1  ;;  %v3139_v5 = vpack.c.bf16 %v68_v3, %v67_v2  ;;  %v64_v6 = vld [vmem:[#allocation5 + $0x8] sm:$0xff]  ;;  %v70_v8 = vld [vmem:[#allocation7 + $0x18] sm:$0xff]  ;;  %v65_v10 = vld [vmem:[#allocation5 + $0x10] sm:$0xff]  ;;  %s3042_s13 = smov 96   ;;  %s3043_s14 = smov [#allocation9]  }
  0x3a   :  { %v3141_v9 = vpack.c.bf16 %v64_v6, %v63_v4  ;;  %v66_v11 = vld [vmem:[#allocation5 + $0x18] sm:$0xff]  ;;  %v3144_v12 = vpack.c.bf16 %v70_v8, %v69_v7  ;;  %v72_v14 = vld [vmem:[#allocation2] sm:$0xff]  ;;  %v367_v32 = vld [vmem:[#allocation2 + $0x8] sm:$0xff]  ;;  %s2409_s15 = sshll.u32 %s3043_s14, 4  ;;  %s2410_s15 = int_to_ptr.vmem [resolvable:$true] %s2409_s15 }
  0x3b   :  { %2718 = vmatpush3.bf16.msra.mxu0 %v3139_v5  ;;  %v3148_v13 = vpack.c.bf16 %v66_v11, %v65_v10  ;;  %v3172_v16 = vld [vmem:[%s3725_s3] ss:$0 sm:$0xff]  ;;  %s3040_s3 = smov 32   ;;  %v655_v53 = vld [vmem:[#allocation2 + $0x10] sm:$0xff]  ;;  %s2957_s16 = scalar_lea.vmem %s2410_s15, 128 }
  0x3c   :  { %2724 = vmatpush3.bf16.msra.mxu1 %v3141_v9  ;;  %2719 = vmatprep.subr.bf16.mxu0 %v3036_v0  ;;  %p2958_p10 = scmp.ne.s32.totalorder %s2410_s15, %s2957_s16  ;;  %p2962_p11 = scmp.lt.s32.totalorder %s2410_s15, %s2410_s15 }
  0x3d   :  { %2725 = vmatprep.subr.bf16.mxu1 %v3036_v0  ;;  %p2963_p12 = scmp.lt.s32.totalorder %s2957_s16, %s2957_s16 }
  0x3f   :  { %2721 = vmatpush3.bf16.msra.mxu0 %v3144_v12  ;;  %p2964_p13 = por %p2963_p12, %p2962_p11 }
  0x40   :  { %2727 = vmatpush3.bf16.msra.mxu1 %v3148_v13  ;;  %2728 = vmatprep.subr.bf16.mxu0 %v3036_v0 }
  0x41   :  { %2734 = vmatprep.subr.bf16.mxu1 %v3036_v0  ;;  %p2965_p0 = pnand %p2964_p13, %p2958_p10 }
  0x42   :  { %2549 = vmatmul.mubr.f32.vlgmr.msra.gmra.mrb[0].mxu0 %v3038_v1 }
  0x43   :  { %2560 = vmatmul.mubr.msk.f32.vlgmr.msra.gmra.mrb[0].mxu1 %vm73_vm1, %v72_v14  ;;  %2730 = vmatpush3.bf16.msra.mxu0 %v3139_v5 }
  0x44   :  { %2736 = vmatpush3.bf16.msra.mxu1 %v3141_v9  ;;  %2731 = vmatprep.subr.bf16.mxu0 %v3036_v0 }
  0x45   :  { %2737 = vmatprep.subr.bf16.mxu1 %v3036_v0  ;;  %2581 = vmatprep.mubr.msk.f32.mxu1 %vm3037_vm0, %v3038_v1 }
  0x46   :  { %2570 = vmatprep.mubr.msk.f32.mxu0 %vm3037_vm0, %v3038_v1 }
  0x47   :  { %2733 = vmatpush3.bf16.msra.mxu0 %v3144_v12 }
  0x48   :  { %2739 = vmatpush3.bf16.msra.mxu1 %v3148_v13  ;;  %2740 = vmatprep.subr.bf16.mxu0 %v3036_v0 }
  0x49   :  { %2746 = vmatprep.subr.bf16.mxu1 %v3036_v0 }
  0x4b   :  { %2582 = vmatmul.mubr.msk.f32.vlgmr.msra.gmra.mrb[2].mxu1 %vm73_vm1, %v367_v32 }
  0x4c   :  { %2748 = vmatpush3.bf16.msra.mxu1 %v3141_v9  ;;  %2603 = vmatprep.mubr.msk.f32.mxu1 %vm3037_vm0, %v3038_v1 }
  0x4d   :  { %2749 = vmatprep.subr.bf16.mxu1 %v3036_v0 }
  0x50   :  { %2751 = vmatpush3.bf16.msra.mxu1 %v3148_v13 }
  0x51   :  { %2758 = vmatprep.subr.bf16.mxu1 %v3036_v0 }
  0x53   :  { %2604 = vmatmul.mubr.msk.f32.vlgmr.msra.gmra.mrb[4].mxu1 %vm73_vm1, %v655_v53 }
  0x54   :  { %2760 = vmatpush3.bf16.msra.mxu1 %v3141_v9  ;;  %2625 = vmatprep.mubr.msk.f32.mxu1 %vm3037_vm0, %v3038_v1 }
  0x55   :  { %2761 = vmatprep.subr.bf16.mxu1 %v3036_v0 }
  0x58   :  { %2763 = vmatpush3.bf16.msra.mxu1 %v3148_v13 }
  0x59   :  { %2770 = vmatprep.subr.bf16.mxu1 %v3036_v0 }
 0x115   :  { %v143_v15 = vpop.f32.mrb[0].mxu0 }
 0x116   :  { %v216_v17 = vpop.f32.mrb[0].mxu1  ;;  %v2550_v18 = vpop.f32.mrb[1].mxu0 }
 0x117   :  { %v217_v19 = vadd.f32 %v216_v17, %v143_v15  ;;  %v2561_v20 = vpop.f32.mrb[1].mxu1  ;;  %v943_v17 = vld [vmem:[#allocation2 + $0x18] sm:$0xff] }
 0x118   :  { %2626 = vmatmul.mubr.msk.f32.vlgmr.msra.gmra.mrb[6].mxu1 %vm73_vm1, %v943_v17 }
 0x119   :  { %v226_v21 = vadd.f32 %v3172_v16, %v217_v19  ;;  %2772 = vmatpush3.bf16.msra.mxu1 %v3141_v9  ;;  %2647 = vmatprep.mubr.msk.f32.mxu1 %vm3037_vm0, %v3038_v1 }
 0x11a   :  { %2773 = vmatprep.subr.bf16.mxu1 %v3036_v0 }
 0x11b   :  { %2827 = vtanh.f32 %v226_v21  ;;  %v2438_v23 = vmul.f32 -1.442695, %v226_v21 }
 0x11d   :  { %2829 = vpow2.f32 %v2438_v23  ;;  %2775 = vmatpush3.bf16.msra.mxu1 %v3148_v13 }
 0x11e   :  { %v511_v36 = vpop.f32.mrb[2].mxu1  ;;  %2782 = vmatprep.subr.bf16.mxu1 %v3036_v0 }
 0x11f   :  { %v2583_v37 = vpop.f32.mrb[3].mxu1 }
 0x125   :  { %v2828_v22 = vpop.eup %2827 }
 0x126   :  { %236 = vrot.lane.b32.xlu0 %v2828_v22, %s3039_s12  ;;  %v799_v57 = vpop.f32.mrb[4].mxu1 }
 0x127   :  { %v2830_v24 = vpop.eup %2829  ;;  %v2605_v58 = vpop.f32.mrb[5].mxu1 }
 0x128   :  { %v230_v25 = vadd.f32 1.0, %v2830_v24 }
 0x12a   :  { %2831 = vrcp.f32 %v230_v25 }
 0x134   :  { %v2832_v26 = vpop.eup %2831 }
 0x135   :  { %v234_v29 = vmul.f32 0.0, %v2832_v26 }
 0x198   :  { %v237_v27 = vpop.permute.xlu0 %236 }
 0x199   :  { %v239_v28 = vmul.f32 %v2832_v26, %v237_v27 }
 0x19b   :  { %241 = vrot.lane.b32.xlu0 %v239_v28, %s3040_s3 }
 0x1eb   :  { %v1087_v21 = vpop.f32.mrb[6].mxu1 }
 0x1ec   :  { %v2627_v22 = vpop.f32.mrb[7].mxu1 }
 0x20d   :  { %v242_v30 = vpop.permute.xlu0 %241 }
 0x20e   :  { %v244_v31 = vadd.f32 %v242_v30, %v234_v29 }
 0x210   :  { %2833 = vtanh.f32 %v244_v31 }
 0x21a   :  { %v2834_v33 = vpop.eup %2833 }
 0x21b   :  { %247 = vrot.lane.b32.xlu1 %v2834_v33, %s3039_s12 }
 0x28d   :  { %v248_v34 = vpop.permute.xlu1 %247 }
 0x28e   :  { %v3185_v35 = vmul.f32 %v2832_v26, %v248_v34 }
 0x290   :  { %368 = vrot.lane.b32.xlu1 %v3185_v35, %s3040_s3 }
 0x302   :  { %v369_v38 = vpop.permute.xlu1 %368 }
 0x303   :  { %2571 = vmatmul.mubr.msk.f32.vlgmr.msra.gmra.mrb[2].mxu0 %vm73_vm1, %v369_v38 }
 0x304   :  { %2742 = vmatpush3.bf16.msra.mxu0 %v3139_v5  ;;  %2592 = vmatprep.mubr.msk.f32.mxu0 %vm3037_vm0, %v3038_v1 }
 0x305   :  { %2743 = vmatprep.subr.bf16.mxu0 %v3036_v0 }
 0x308   :  { %2745 = vmatpush3.bf16.msra.mxu0 %v3144_v12 }
 0x309   :  { %2752 = vmatprep.subr.bf16.mxu0 %v3036_v0 }
 0x3d6   :  { %v438_v39 = vpop.f32.mrb[2].mxu0 }
 0x3d7   :  { %v512_v40 = vadd.f32 %v511_v36, %v438_v39  ;;  %v2572_v41 = vpop.f32.mrb[3].mxu0  ;;  %v1231_v39 = vld [vmem:[#allocation2 + $0x20] sm:$0xff] }
 0x3d8   :  { %2648 = vmatmul.mubr.msk.f32.vlgmr.msra.gmra.mrb[8].mxu1 %vm73_vm1, %v1231_v39 }
 0x3d9   :  { %v515_v42 = vadd.f32 %v3172_v16, %v512_v40  ;;  %2784 = vmatpush3.bf16.msra.mxu1 %v3141_v9  ;;  %2669 = vmatprep.mubr.msk.f32.mxu1 %vm3037_vm0, %v3038_v1 }
 0x3da   :  { %2785 = vmatprep.subr.bf16.mxu1 %v3036_v0 }
 0x3db   :  { %2835 = vtanh.f32 %v515_v42  ;;  %v2441_v44 = vmul.f32 -1.442695, %v515_v42 }
 0x3dd   :  { %2837 = vpow2.f32 %v2441_v44  ;;  %2787 = vmatpush3.bf16.msra.mxu1 %v3148_v13 }
 0x3de   :  { %2794 = vmatprep.subr.bf16.mxu1 %v3036_v0 }
 0x3e5   :  { %v2836_v43 = vpop.eup %2835 }
 0x3e6   :  { %525 = vrot.lane.b32.xlu0 %v2836_v43, %s3039_s12 }
 0x3e7   :  { %v2838_v45 = vpop.eup %2837 }
 0x3e8   :  { %v519_v46 = vadd.f32 1.0, %v2838_v45 }
 0x3ea   :  { %2839 = vrcp.f32 %v519_v46 }
 0x3f4   :  { %v2840_v47 = vpop.eup %2839 }
 0x3f5   :  { %v523_v50 = vmul.f32 %v2840_v47, %v244_v31 }
 0x458   :  { %v526_v48 = vpop.permute.xlu0 %525 }
 0x459   :  { %v528_v49 = vmul.f32 %v2840_v47, %v526_v48 }
 0x45b   :  { %530 = vrot.lane.b32.xlu1 %v528_v49, %s3040_s3 }
 0x4ab   :  { %v1375_v43 = vpop.f32.mrb[8].mxu1 }
 0x4ac   :  { %v2649_v44 = vpop.f32.mrb[9].mxu1 }
 0x4cd   :  { %v531_v51 = vpop.permute.xlu1 %530 }
 0x4ce   :  { %v533_v52 = vadd.f32 %v531_v51, %v523_v50 }
 0x4d0   :  { %2841 = vtanh.f32 %v533_v52 }
 0x4da   :  { %v2842_v54 = vpop.eup %2841 }
 0x4db   :  { %536 = vrot.lane.b32.xlu0 %v2842_v54, %s3039_s12 }
 0x54d   :  { %v537_v55 = vpop.permute.xlu0 %536 }
 0x54e   :  { %v3207_v56 = vmul.f32 %v2840_v47, %v537_v55 }
 0x550   :  { %656 = vrot.lane.b32.xlu1 %v3207_v56, %s3040_s3 }
 0x5c2   :  { %v657_v59 = vpop.permute.xlu1 %656 }
 0x5c3   :  { %2593 = vmatmul.mubr.msk.f32.vlgmr.msra.gmra.mrb[4].mxu0 %vm73_vm1, %v657_v59 }
 0x5c4   :  { %2754 = vmatpush3.bf16.msra.mxu0 %v3139_v5  ;;  %2614 = vmatprep.mubr.msk.f32.mxu0 %vm3037_vm0, %v3038_v1 }
 0x5c5   :  { %2755 = vmatprep.subr.bf16.mxu0 %v3036_v0 }
 0x5c8   :  { %2757 = vmatpush3.bf16.msra.mxu0 %v3144_v12 }
 0x5c9   :  { %2764 = vmatprep.subr.bf16.mxu0 %v3036_v0 }
 0x696   :  { %v726_v60 = vpop.f32.mrb[4].mxu0 }
 0x697   :  { %v800_v61 = vadd.f32 %v799_v57, %v726_v60  ;;  %v2594_v62 = vpop.f32.mrb[5].mxu0 }
 0x699   :  { %v803_v63 = vadd.f32 %v3172_v16, %v800_v61  ;;  %v1519_v61 = vld [vmem:[#allocation2 + $0x28] sm:$0xff] }
 0x69a   :  { %2670 = vmatmul.mubr.msk.f32.vlgmr.msra.gmra.mrb[10].mxu1 %vm73_vm1, %v1519_v61 }
 0x69b   :  { %2843 = vtanh.f32 %v803_v63  ;;  %v2444_v3 = vmul.f32 -1.442695, %v803_v63  ;;  %2796 = vmatpush3.bf16.msra.mxu1 %v3141_v9  ;;  %2691 = vmatprep.mubr.msk.f32.mxu1 %vm3037_vm0, %v3038_v1 }
 0x69c   :  { %2797 = vmatprep.subr.bf16.mxu1 %v3036_v0 }
 0x69d   :  { %2845 = vpow2.f32 %v2444_v3 }
 0x69f   :  { %2799 = vmatpush3.bf16.msra.mxu1 %v3148_v13 }
 0x6a0   :  { %2806 = vmatprep.subr.bf16.mxu1 %v3036_v0 }
 0x6a5   :  { %v2844_v2 = vpop.eup %2843 }
 0x6a6   :  { %813 = vrot.lane.b32.xlu0 %v2844_v2, %s3039_s12 }
 0x6a7   :  { %v2846_v4 = vpop.eup %2845 }
 0x6a8   :  { %v807_v6 = vadd.f32 1.0, %v2846_v4 }
 0x6aa   :  { %2847 = vrcp.f32 %v807_v6 }
 0x6b4   :  { %v2848_v7 = vpop.eup %2847 }
 0x6b5   :  { %v811_v11 = vmul.f32 %v2848_v7, %v533_v52 }
 0x718   :  { %v814_v8 = vpop.permute.xlu0 %813 }
 0x719   :  { %v816_v10 = vmul.f32 %v2848_v7, %v814_v8 }
 0x71b   :  { %818 = vrot.lane.b32.xlu1 %v816_v10, %s3040_s3 }
 0x76d   :  { %v1663_v3 = vpop.f32.mrb[10].mxu1 }
 0x76e   :  { %v2671_v4 = vpop.f32.mrb[11].mxu1 }
 0x78d   :  { %v819_v14 = vpop.permute.xlu1 %818 }
 0x78e   :  { %v821_v15 = vadd.f32 %v819_v14, %v811_v11 }
 0x790   :  { %2849 = vtanh.f32 %v821_v15 }
 0x79a   :  { %v2850_v18 = vpop.eup %2849 }
 0x79b   :  { %824 = vrot.lane.b32.xlu0 %v2850_v18, %s3039_s12 }
 0x80d   :  { %v825_v19 = vpop.permute.xlu0 %824 }
 0x80e   :  { %v3229_v20 = vmul.f32 %v2848_v7, %v825_v19 }
 0x810   :  { %944 = vrot.lane.b32.xlu1 %v3229_v20, %s3040_s3 }
 0x882   :  { %v945_v23 = vpop.permute.xlu1 %944 }
 0x883   :  { %2615 = vmatmul.mubr.msk.f32.vlgmr.msra.gmra.mrb[6].mxu0 %vm73_vm1, %v945_v23 }
 0x884   :  { %2766 = vmatpush3.bf16.msra.mxu0 %v3139_v5  ;;  %2636 = vmatprep.mubr.msk.f32.mxu0 %vm3037_vm0, %v3038_v1 }
 0x885   :  { %2767 = vmatprep.subr.bf16.mxu0 %v3036_v0 }
 0x888   :  { %2769 = vmatpush3.bf16.msra.mxu0 %v3144_v12 }
 0x889   :  { %2776 = vmatprep.subr.bf16.mxu0 %v3036_v0 }
 0x956   :  { %v1014_v24 = vpop.f32.mrb[6].mxu0 }
 0x957   :  { %v1088_v25 = vadd.f32 %v1087_v21, %v1014_v24  ;;  %v2616_v26 = vpop.f32.mrb[7].mxu0 }
 0x958   :  { %v1807_v26 = vld [vmem:[#allocation2 + $0x30] sm:$0xff] }
 0x959   :  { %v1091_v27 = vadd.f32 %v3172_v16, %v1088_v25  ;;  %2692 = vmatmul.mubr.msk.f32.vlgmr.msra.gmra.mrb[12].mxu1 %vm73_vm1, %v1807_v26 }
 0x95a   :  { %2808 = vmatpush3.bf16.msra.mxu1 %v3141_v9  ;;  %2713 = vmatprep.mubr.msk.f32.mxu1 %vm3037_vm0, %v3038_v1 }
 0x95b   :  { %2851 = vtanh.f32 %v1091_v27  ;;  %v2447_v29 = vmul.f32 -1.442695, %v1091_v27  ;;  %2809 = vmatprep.subr.bf16.mxu1 %v3036_v0 }
 0x95d   :  { %2853 = vpow2.f32 %v2447_v29 }
 0x95e   :  { %2811 = vmatpush3.bf16.msra.mxu1 %v3148_v13 }
 0x965   :  { %v2852_v28 = vpop.eup %2851 }
 0x966   :  { %1101 = vrot.lane.b32.xlu0 %v2852_v28, %s3039_s12 }
 0x967   :  { %v2854_v30 = vpop.eup %2853 }
 0x968   :  { %v1095_v31 = vadd.f32 1.0, %v2854_v30 }
 0x96a   :  { %2855 = vrcp.f32 %v1095_v31 }
 0x974   :  { %v2856_v32 = vpop.eup %2855 }
 0x975   :  { %v1099_v36 = vmul.f32 %v2856_v32, %v821_v15 }
 0x9d8   :  { %v1102_v33 = vpop.permute.xlu0 %1101 }
 0x9d9   :  { %v1104_v34 = vmul.f32 %v2856_v32, %v1102_v33 }
 0x9db   :  { %1106 = vrot.lane.b32.xlu1 %v1104_v34, %s3040_s3 }
 0xa2c   :  { %v1951_v30 = vpop.f32.mrb[12].mxu1 }
 0xa2d   :  { %v2693_v31 = vpop.f32.mrb[13].mxu1 }
 0xa2e   :  { %v829_v31 = vcombine.high %v3229_v20, %v3229_v20 }
 0xa4d   :  { %v1107_v37 = vpop.permute.xlu1 %1106 }
 0xa4e   :  { %v1109_v38 = vadd.f32 %v1107_v37, %v1099_v36 }
 0xa50   :  { %2857 = vtanh.f32 %v1109_v38 }
 0xa5a   :  { %v2858_v40 = vpop.eup %2857 }
 0xa5b   :  { %1112 = vrot.lane.b32.xlu0 %v2858_v40, %s3039_s12 }
 0xacd   :  { %v1113_v41 = vpop.permute.xlu0 %1112 }
 0xace   :  { %v3251_v42 = vmul.f32 %v2856_v32, %v1113_v41 }
 0xad0   :  { %1232 = vrot.lane.b32.xlu1 %v3251_v42, %s3040_s3 }
 0xb42   :  { %v1233_v45 = vpop.permute.xlu1 %1232 }
 0xb43   :  { %2637 = vmatmul.mubr.msk.f32.vlgmr.msra.gmra.mrb[8].mxu0 %vm73_vm1, %v1233_v45 }
 0xb44   :  { %2778 = vmatpush3.bf16.msra.mxu0 %v3139_v5  ;;  %2658 = vmatprep.mubr.msk.f32.mxu0 %vm3037_vm0, %v3038_v1 }
 0xb45   :  { %2779 = vmatprep.subr.bf16.mxu0 %v3036_v0 }
 0xb48   :  { %2781 = vmatpush3.bf16.msra.mxu0 %v3144_v12 }
 0xb49   :  { %2788 = vmatprep.subr.bf16.mxu0 %v3036_v0 }
 0xc16   :  { %v1302_v46 = vpop.f32.mrb[8].mxu0 }
 0xc17   :  { %v1376_v47 = vadd.f32 %v1375_v43, %v1302_v46  ;;  %v2638_v48 = vpop.f32.mrb[9].mxu0  ;;  %v2095_v43 = vld [vmem:[#allocation2 + $0x38] sm:$0xff] }
 0xc18   :  { %2714 = vmatmul.mubr.msk.f32.vlgmr.msra.gmra.mrb[14].mxu1 %vm73_vm1, %v2095_v43 }
 0xc19   :  { %v1379_v49 = vadd.f32 %v3172_v16, %v1376_v47 }
 0xc1b   :  { %2859 = vtanh.f32 %v1379_v49  ;;  %v2450_v51 = vmul.f32 -1.442695, %v1379_v49 }
 0xc1d   :  { %2861 = vpow2.f32 %v2450_v51 }
 0xc25   :  { %v2860_v50 = vpop.eup %2859 }
 0xc26   :  { %1389 = vrot.lane.b32.xlu0 %v2860_v50, %s3039_s12  ;;  %v3041_v50 = vmov 1966171168  }
 0xc27   :  { %v2862_v52 = vpop.eup %2861  ;;  %v254_v51 = vunpack.c.l.s4 %v3041_v50 }
 0xc28   :  { %v1383_v53 = vadd.f32 1.0, %v2862_v52  ;;  %v256_v52 = vlaneseq }
 0xc2a   :  { %2863 = vrcp.f32 %v1383_v53  ;;  %v255_v53 = vunpack.c.0.s8 %v254_v51 }
 0xc34   :  { %v2864_v54 = vpop.eup %2863 }
 0xc35   :  { %v1387_v58 = vmul.f32 %v2864_v54, %v1109_v38 }
 0xc98   :  { %v1390_v55 = vpop.permute.xlu0 %1389 }
 0xc99   :  { %v1392_v57 = vmul.f32 %v2864_v54, %v1390_v55 }
 0xc9b   :  { %1394 = vrot.lane.b32.xlu1 %v1392_v57, %s3040_s3 }
 0xceb   :  { %v2239_v47 = vpop.f32.mrb[14].mxu1 }
 0xcec   :  { %v2715_v48 = vpop.f32.mrb[15].mxu1 }
 0xd0d   :  { %v1395_v59 = vpop.permute.xlu1 %1394 }
 0xd0e   :  { %v1397_v60 = vadd.f32 %v1395_v59, %v1387_v58 }
 0xd10   :  { %2865 = vtanh.f32 %v1397_v60 }
 0xd1a   :  { %v2866_v62 = vpop.eup %2865 }
 0xd1b   :  { %1400 = vrot.lane.b32.xlu0 %v2866_v62, %s3039_s12  ;;  %v252_v62 = vcombine.high %v3185_v35, %v3185_v35 }
 0xd8d   :  { %v1401_v63 = vpop.permute.xlu0 %1400 }
 0xd8e   :  { %v3273_v2 = vmul.f32 %v2864_v54, %v1401_v63  ;;  %v257_v54 = vshrl.u32 %v256_v52, 7 }
 0xd90   :  { %1520 = vrot.lane.b32.xlu1 %v3273_v2, %s3040_s3  ;;  %v3317_v59 = vsub.s32 %v255_v53, %v257_v54 }
 0xd92   :  { %v259_v61 = vrot.slane %v3185_v35, %v3317_v59 }
 0xd94   :  { %v267_v63 = vcombine.high %v259_v61, %v259_v61  ;;  %v3331_v4 = vrot.slane %v259_v61, %v3317_v59 }
 0xe02   :  { %v1521_v6 = vpop.permute.xlu1 %1520 }
 0xe03   :  { %2659 = vmatmul.mubr.msk.f32.vlgmr.msra.gmra.mrb[10].mxu0 %vm73_vm1, %v1521_v6  ;;  %v3333_v6 = vsub.s32 0, %v257_v54 }
 0xe04   :  { %2790 = vmatpush3.bf16.msra.mxu0 %v3139_v5  ;;  %2680 = vmatprep.mubr.msk.f32.mxu0 %vm3037_vm0, %v3038_v1 }
 0xe05   :  { %2791 = vmatprep.subr.bf16.mxu0 %v3036_v0 }
 0xe08   :  { %2793 = vmatpush3.bf16.msra.mxu0 %v3144_v12 }
 0xe09   :  { %2800 = vmatprep.subr.bf16.mxu0 %v3036_v0 }
 0xed6   :  { %v1590_v7 = vpop.f32.mrb[10].mxu0 }
 0xed7   :  { %v1664_v8 = vadd.f32 %v1663_v3, %v1590_v7  ;;  %v2660_v10 = vpop.f32.mrb[11].mxu0  ;;  %v3328_v3 = vrot.slane %v252_v62, %v3317_v59 }
 0xed9   :  { %v1667_v11 = vadd.f32 %v3172_v16, %v1664_v8  ;;  %v304_v8 = vrot.slane %v3331_v4, %v3333_v6  ;;  %v268_v10 = vcombine.high %v3328_v3, %v3328_v3 }
 0xedb   :  { %2867 = vtanh.f32 %v1667_v11  ;;  %v2453_v15 = vmul.f32 -1.442695, %v1667_v11  ;;  %v3348_v11 = vrot.slane %v3207_v56, %v3317_v59 }
 0xedd   :  { %2869 = vpow2.f32 %v2453_v15  ;;  %v296_v15 = vrot.slane %v268_v10, %v3317_v59 }
 0xee5   :  { %v2868_v14 = vpop.eup %2867 }
 0xee6   :  { %1677 = vrot.lane.b32.xlu0 %v2868_v14, %s3039_s12 }
 0xee7   :  { %v2870_v17 = vpop.eup %2869 }
 0xee8   :  { %v1671_v18 = vadd.f32 1.0, %v2870_v17  ;;  %v541_v17 = vcombine.high %v3207_v56, %v3207_v56 }
 0xeea   :  { %2871 = vrcp.f32 %v1671_v18  ;;  %v556_v18 = vcombine.high %v3348_v11, %v3348_v11 }
 0xef4   :  { %v2872_v19 = vpop.eup %2871 }
 0xef5   :  { %v1675_v23 = vmul.f32 %v2872_v19, %v1397_v60 }
 0xf58   :  { %v1678_v21 = vpop.permute.xlu0 %1677 }
 0xf59   :  { %v1680_v22 = vmul.f32 %v2872_v19, %v1678_v21  ;;  %v300_v21 = vcombine.high %v296_v15, %v296_v15 }
 0xf5b   :  { %1682 = vrot.lane.b32.xlu1 %v1680_v22, %s3040_s3  ;;  %v3360_v22 = vrot.slane %v541_v17, %v3317_v59  ;;  %v564_v17 = vrot.slane %v3348_v11, %v3317_v59 }
 0xf5d   :  { %v557_v26 = vcombine.high %v3360_v22, %v3360_v22 }
 0xfcd   :  { %v1683_v24 = vpop.permute.xlu1 %1682 }
 0xfce   :  { %v1685_v25 = vadd.f32 %v1683_v24, %v1675_v23  ;;  %v332_v23 = vrot.slane %v300_v21, %v3333_v6  ;;  %v578_v24 = vrot.slane %v556_v18, %v3317_v59  ;;  %v593_v18 = vrot.slane %v564_v17, %v3333_v6 }
 0xfd0   :  { %2873 = vtanh.f32 %v1685_v25  ;;  %v588_v56 = vcombine.high %v578_v24, %v578_v24 }
 0xfda   :  { %v2874_v27 = vpop.eup %2873 }
 0xfdb   :  { %1688 = vrot.lane.b32.xlu0 %v2874_v27, %s3039_s12  ;;  %v3371_v27 = vrot.slane %v3229_v20, %v3317_v59 }
0x104d   :  { %v1689_v28 = vpop.permute.xlu0 %1688 }
0x104e   :  { %v3294_v29 = vmul.f32 %v2872_v19, %v1689_v28  ;;  %v324_v19 = vrot.slane %v296_v15, %v3333_v6  ;;  %v605_v28 = vrot.slane %v588_v56, %v3333_v6 }
0x1050   :  { %1808 = vrot.lane.b32.xlu1 %v3294_v29, %s3040_s3 }
0x10c2   :  { %v1809_v32 = vpop.permute.xlu1 %1808 }
0x10c3   :  { %2681 = vmatmul.mubr.msk.f32.vlgmr.msra.gmra.mrb[12].mxu0 %vm73_vm1, %v1809_v32  ;;  %v844_v32 = vcombine.high %v3371_v27, %v3371_v27 }
0x10c4   :  { %2802 = vmatpush3.bf16.msra.mxu0 %v3139_v5  ;;  %2702 = vmatprep.mubr.msk.f32.mxu0 %vm3037_vm0, %v3038_v1 }
0x10c5   :  { %2803 = vmatprep.subr.bf16.mxu0 %v3036_v0 }
0x10c8   :  { %2805 = vmatpush3.bf16.msra.mxu0 %v3144_v12 }
0x1196   :  { %v1878_v9 = vpop.f32.mrb[12].mxu0 }
0x1197   :  { %v1952_v13 = vadd.f32 %v1951_v30, %v1878_v9  ;;  %v2682_v33 = vpop.f32.mrb[13].mxu0  ;;  %v585_v30 = vrot.slane %v557_v26, %v3317_v59 }
0x1198   :  { %v3383_v33 = vrot.slane %v829_v31, %v3317_v59 }
0x1199   :  { %v1955_v34 = vadd.f32 %v3172_v16, %v1952_v13  ;;  %v613_v9 = vrot.slane %v585_v30, %v3333_v6  ;;  %v589_v13 = vcombine.high %v585_v30, %v585_v30  ;;  %v852_v30 = vrot.slane %v3371_v27, %v3317_v59 }
0x119b   :  { %2875 = vtanh.f32 %v1955_v34  ;;  %v2456_v37 = vmul.f32 -1.442695, %v1955_v34  ;;  %v621_v34 = vrot.slane %v589_v13, %v3333_v6  ;;  %v881_v31 = vrot.slane %v852_v30, %v3333_v6 }
0x119d   :  { %2877 = vpow2.f32 %v2456_v37 }
0x11a5   :  { %v2876_v36 = vpop.eup %2875 }
0x11a6   :  { %1965 = vrot.lane.b32.xlu0 %v2876_v36, %s3039_s12  ;;  %v866_v36 = vrot.slane %v844_v32, %v3317_v59  ;;  %v874_v32 = vcombine.high %v852_v30, %v852_v30 }
0x11a7   :  { %v2878_v38 = vpop.eup %2877 }
0x11a8   :  { %v1959_v5 = vadd.f32 1.0, %v2878_v38  ;;  %v885_v37 = vrot.slane %v866_v36, %v3333_v6  ;;  %v876_v20 = vcombine.high %v866_v36, %v866_v36  ;;  %v845_v38 = vcombine.high %v3383_v33, %v3383_v33 }
0x11a9   :  { %v889_v13 = vrot.slane %v874_v32, %v3333_v6 }
0x11aa   :  { %2879 = vrcp.f32 %v1959_v5  ;;  %v3394_v5 = vrot.slane %v3251_v42, %v3317_v59 }
0x11b4   :  { %v2880_v39 = vpop.eup %2879 }
0x11b5   :  { %v1963_v0 = vmul.f32 %v2880_v39, %v1685_v25  ;;  %v597_v25 = vrot.slane %v578_v24, %v3333_v6  ;;  %v571_v24 = vrot.slane %v3360_v22, %v3317_v59 }
0x11b7   :  { %v587_v56 = vcombine.high %v571_v24, %v571_v24 }
0x1218   :  { %v1966_v1 = vpop.permute.xlu0 %1965 }
0x1219   :  { %v1968_v40 = vmul.f32 %v2880_v39, %v1966_v1  ;;  %v873_v1 = vrot.slane %v845_v38, %v3317_v59 }
0x121b   :  { %1970 = vrot.lane.b32.xlu1 %v1968_v40, %s3040_s3  ;;  %v1117_v40 = vcombine.high %v3251_v42, %v3251_v42  ;;  %v877_v43 = vcombine.high %v873_v1, %v873_v1 }
0x128d   :  { %v1971_v12 = vpop.permute.xlu1 %1970 }
0x128e   :  { %v3307_v41 = vadd.f32 %v1971_v12, %v1963_v0  ;;  %v1132_v0 = vcombine.high %v3394_v5, %v3394_v5  ;;  %v901_v12 = vrot.slane %v873_v1, %v3333_v6 }
0x1290   :  { %2881 = vtanh.f32 %v3307_v41 }
0x129a   :  { %v2882_v44 = vpop.eup %2881 }
0x129b   :  { %1976 = vrot.lane.b32.xlu0 %v2882_v44, %s3039_s12  ;;  %v3406_v44 = vrot.slane %v1117_v40, %v3317_v59 }
0x130d   :  { %v1977_v45 = vpop.permute.xlu0 %1976 }
0x130e   :  { %v3312_v46 = vmul.f32 %v2880_v39, %v1977_v45  ;;  %v893_v39 = vrot.slane %v876_v20, %v3333_v6  ;;  %v909_v45 = vrot.slane %v877_v43, %v3333_v6  ;;  %v1147_v43 = vrot.slane %v3406_v44, %v3317_v59 }
0x1310   :  { %2096 = vrot.lane.b32.xlu1 %v3312_v46, %s3040_s3 }
0x1382   :  { %v2097_v49 = vpop.permute.xlu1 %2096 }
0x1383   :  { %2703 = vmatmul.mubr.msk.f32.vlgmr.msra.gmra.mrb[14].mxu0 %vm73_vm1, %v2097_v49  ;;  %v1133_v49 = vcombine.high %v3406_v44, %v3406_v44 }
0x1385   :  { %v3417_v51 = vrot.slane %v1133_v49, %v3317_v59 }
0x1387   :  { %v1189_v52 = vrot.slane %v3417_v51, %v3333_v6 }
0x1456   :  { %v2166_v55 = vpop.f32.mrb[14].mxu0 }
0x1457   :  { %v2240_v57 = vadd.f32 %v2239_v47, %v2166_v55  ;;  %v2704_v58 = vpop.f32.mrb[15].mxu0  ;;  %v1154_v47 = vrot.slane %v1132_v0, %v3317_v59 }
0x1459   :  { %v3320_v60 = vadd.f32 %v3172_v16, %v2240_v57  ;;  %v3336_v16 = vrot.slane %v267_v63, %v3317_v59  ;;  %v1173_v48 = vrot.slane %v1154_v47, %v3333_v6  ;;  %v1164_v42 = vcombine.high %v1154_v47, %v1154_v47 }
0x145a   :  { %v3491_v47 = vrot.slane %v3273_v2, %v3317_v59 }
0x145b   :  { %2883 = vtanh.f32 %v3320_v60  ;;  %v299_v35 = vcombine.high %v3336_v16, %v3336_v16  ;;  %v1181_v50 = vrot.slane %v1164_v42, %v3333_v6  ;;  %v2459_v53 = vmul.f32 -1.442695, %v3320_v60 }
0x145c   :  { %v308_v63 = vrot.slane %v3336_v16, %v3333_v6  ;;  %v297_v60 = vcombine.high %v3331_v4, %v3331_v4  ;;  %v1163_v42 = vcombine.high %v1147_v43, %v1147_v43 }
0x145d   :  { %v316_v14 = vrot.slane %v299_v35, %v3333_v6  ;;  %2885 = vpow2.f32 %v2459_v53  ;;  %v282_v35 = vrot.slane %v3328_v3, %v3317_v59 }
0x145e   :  { %v1193_v44 = vrot.slane %v1163_v42, %v3333_v6 }
0x145f   :  { %v320_v16 = vrot.slane %v282_v35, %v3333_v6 }
0x1465   :  { %v2884_v7 = vpop.eup %2883 }
0x1466   :  { %2253 = vrot.lane.b32.xlu0 %v2884_v7, %s3039_s12 }
0x1467   :  { %v2886_v54 = vpop.eup %2885 }
0x1468   :  { %v2247_v55 = vadd.f32 1.0, %v2886_v54  ;;  %v3509_v54 = vrot.slane %v3294_v29, %v3317_v59 }
0x146a   :  { %333 = vrot.lane.b32.xlu0 %v304_v8, %s3040_s3  ;;  %2887 = vrcp.f32 %v2247_v55  ;;  %v312_v8 = vrot.slane %v297_v60, %v3333_v6  ;;  %v1716_v42 = vrot.slane %v3509_v54, %v3317_v59 }
0x146e   :  { %339 = vrot.lane.b32.xlu0 %v316_v14, %s3040_s3  ;;  %v298_v14 = vcombine.high %v282_v35, %v282_v35 }
0x1470   :  { %v328_v15 = vrot.slane %v298_v14, %v3333_v6  ;;  %v3532_v14 = vrot.slane %v3312_v46, %v3317_v59 }
0x1472   :  { %343 = vrot.lane.b32.xlu0 %v324_v19, %s3040_s3  ;;  %v586_v19 = vcombine.high %v564_v17, %v564_v17  ;;  %v1981_v17 = vcombine.high %v3312_v46, %v3312_v46 }
0x1474   :  { %v3424_v57 = vpop.eup %2887 }
0x1476   :  { %347 = vrot.lane.b32.xlu0 %v332_v23, %s3040_s3  ;;  %v601_v23 = vrot.slane %v586_v19, %v3333_v6 }
0x147a   :  { %624 = vrot.lane.b32.xlu0 %v597_v25, %s3040_s3  ;;  %v609_v25 = vrot.slane %v571_v24, %v3333_v6 }
0x147e   :  { %628 = vrot.lane.b32.xlu0 %v605_v28, %s3040_s3  ;;  %v617_v28 = vrot.slane %v587_v56, %v3333_v6 }
0x1482   :  { %632 = vrot.lane.b32.xlu0 %v613_v9, %s3040_s3 }
0x1486   :  { %636 = vrot.lane.b32.xlu0 %v621_v34, %s3040_s3  ;;  %v859_v34 = vrot.slane %v3383_v33, %v3317_v59 }
0x1488   :  { %v897_v36 = vrot.slane %v859_v34, %v3333_v6 }
0x148a   :  { %912 = vrot.lane.b32.xlu0 %v885_v37, %s3040_s3  ;;  %v875_v37 = vcombine.high %v859_v34, %v859_v34 }
0x148c   :  { %v905_v38 = vrot.slane %v875_v37, %v3333_v6  ;;  %v1165_v37 = vcombine.high %v3417_v51, %v3417_v51 }
0x148e   :  { %916 = vrot.lane.b32.xlu0 %v893_v39, %s3040_s3  ;;  %v1140_v39 = vrot.slane %v3394_v5, %v3317_v59 }
0x1490   :  { %v1169_v1 = vrot.slane %v1140_v39, %v3333_v6  ;;  %v1162_v40 = vcombine.high %v1140_v39, %v1140_v39 }
0x1492   :  { %920 = vrot.lane.b32.xlu0 %v901_v12, %s3040_s3  ;;  %v1177_v12 = vrot.slane %v1162_v40, %v3333_v6 }
0x1496   :  { %924 = vrot.lane.b32.xlu0 %v909_v45, %s3040_s3  ;;  %v1405_v45 = vcombine.high %v3273_v2, %v3273_v2 }
0x1498   :  { %v3497_v49 = vrot.slane %v1405_v45, %v3317_v59 }
0x149a   :  { %1200 = vrot.lane.b32.xlu0 %v1173_v48, %s3040_s3  ;;  %v1185_v48 = vrot.slane %v1147_v43, %v3333_v6  ;;  %v1421_v53 = vcombine.high %v3497_v49, %v3497_v49 }
0x149e   :  { %1204 = vrot.lane.b32.xlu0 %v1181_v50, %s3040_s3  ;;  %v1428_v50 = vrot.slane %v3491_v47, %v3317_v59 }
0x14a0   :  { %v1457_v2 = vrot.slane %v1428_v50, %v3333_v6 }
0x14a2   :  { %1208 = vrot.lane.b32.xlu0 %v1189_v52, %s3040_s3  ;;  %v1450_v52 = vcombine.high %v1428_v50, %v1428_v50  ;;  %v1738_v50 = vcombine.high %v1716_v42, %v1716_v42 }
0x14a4   :  { %v1465_v55 = vrot.slane %v1450_v52, %v3333_v6  ;;  %v1753_v52 = vrot.slane %v1738_v50, %v3333_v6 }
0x14d8   :  { %v2254_v58 = vpop.permute.xlu0 %2253 }
0x14d9   :  { %v2256_v61 = vmul.f32 %v3424_v57, %v2254_v58  ;;  %v1449_v58 = vrot.slane %v1421_v53, %v3317_v59 }
0x14db   :  { %2258 = vrot.lane.b32.xlu1 %v2256_v61, %s3040_s3  ;;  %v1693_v61 = vcombine.high %v3294_v29, %v3294_v29  ;;  %v1453_v60 = vcombine.high %v1449_v58, %v1449_v58 }
0x14dc   :  { %v334_v62 = vpop.permute.xlu0 %333 }
0x14dd   :  { %358 = vst.msk [vmem:[#allocation8] sm:$0x1] %vm357_vm2, %v334_v62  ;;  %v1708_v62 = vcombine.high %v3509_v54, %v3509_v54 }
0x14df   :  { %335 = vrot.lane.b32.xlu1 %v308_v63, %s3040_s3  ;;  %v1477_v63 = vrot.slane %v1449_v58, %v3333_v6  ;;  %v1730_v35 = vrot.slane %v1708_v62, %v3317_v59 }
0x14e0   :  { %v340_v7 = vpop.permute.xlu0 %339 }
0x14e1   :  { %361 = vst.msk [vmem:[#allocation8 + $0x18] sm:$0x1] %vm357_vm2, %v340_v7  ;;  %v3521_v7 = vrot.slane %v1693_v61, %v3317_v59  ;;  %v1740_v29 = vcombine.high %v1730_v35, %v1730_v35 }
0x14e3   :  { %337 = vrot.lane.b32.xlu1 %v312_v8, %s3040_s3  ;;  %v1485_v8 = vrot.slane %v1453_v60, %v3333_v6  ;;  %v1723_v53 = vrot.slane %v3521_v7, %v3317_v59 }
0x14e4   :  { %v344_v10 = vpop.permute.xlu0 %343 }
0x14e5   :  { %363 = vst.msk [vmem:[#allocation8 + $0x28] sm:$0x1] %vm357_vm2, %v344_v10  ;;  %v1749_v10 = vrot.slane %v1730_v35, %v3333_v6  ;;  %v1739_v58 = vcombine.high %v1723_v53, %v1723_v53 }
0x14e7   :  { %341 = vrot.lane.b32.xlu1 %v320_v16, %s3040_s3  ;;  %v1709_v16 = vcombine.high %v3521_v7, %v3521_v7  ;;  %v1769_v62 = vrot.slane %v1739_v58, %v3333_v6 }
0x14e8   :  { %v348_v4 = vpop.permute.xlu0 %347 }
0x14e9   :  { %365 = vst.msk [vmem:[#allocation8 + $0x38] sm:$0x1] %vm357_vm2, %v348_v4  ;;  %v1757_v4 = vrot.slane %v1740_v29, %v3333_v6 }
0x14eb   :  { %345 = vrot.lane.b32.xlu1 %v328_v15, %s3040_s3  ;;  %v1737_v15 = vrot.slane %v1709_v16, %v3317_v59 }
0x14ec   :  { %v625_v3 = vpop.permute.xlu0 %624 }
0x14ed   :  { %647 = vst.msk [vmem:[#allocation8 + $0x9] sm:$0x1] %vm357_vm2, %v625_v3  ;;  %v1996_v3 = vcombine.high %v3532_v14, %v3532_v14  ;;  %v1741_v19 = vcombine.high %v1737_v15, %v1737_v15 }
0x14ef   :  { %622 = vrot.lane.b32.xlu1 %v593_v18, %s3040_s3  ;;  %v1765_v18 = vrot.slane %v1737_v15, %v3333_v6  ;;  %v2018_v24 = vrot.slane %v1996_v3, %v3317_v59 }
0x14f0   :  { %v629_v21 = vpop.permute.xlu0 %628 }
0x14f1   :  { %649 = vst.msk [vmem:[#allocation8 + $0x19] sm:$0x1] %vm357_vm2, %v629_v21  ;;  %v3544_v21 = vrot.slane %v1981_v17, %v3317_v59  ;;  %v2028_v46 = vcombine.high %v2018_v24, %v2018_v24 }
0x14f3   :  { %626 = vrot.lane.b32.xlu1 %v601_v23, %s3040_s3  ;;  %v1773_v23 = vrot.slane %v1741_v19, %v3333_v6  ;;  %v2045_v56 = vrot.slane %v2028_v46, %v3333_v6  ;;  %v2011_v29 = vrot.slane %v3544_v21, %v3317_v59 }
0x14f4   :  { %v633_v11 = vpop.permute.xlu0 %632 }
0x14f5   :  { %651 = vst.msk [vmem:[#allocation8 + $0x29] sm:$0x1] %vm357_vm2, %v633_v11  ;;  %v2037_v11 = vrot.slane %v2018_v24, %v3333_v6 }
0x14f7   :  { %630 = vrot.lane.b32.xlu1 %v609_v25, %s3040_s3  ;;  %v1997_v25 = vcombine.high %v3544_v21, %v3544_v21 }
0x14f8   :  { %v637_v26 = vpop.permute.xlu0 %636 }
0x14f9   :  { %653 = vst.msk [vmem:[#allocation8 + $0x39] sm:$0x1] %vm357_vm2, %v637_v26  ;;  %v2025_v26 = vrot.slane %v1997_v25, %v3317_v59 }
0x14fb   :  { %634 = vrot.lane.b32.xlu1 %v617_v28, %s3040_s3  ;;  %v2053_v28 = vrot.slane %v2025_v26, %v3333_v6  ;;  %v2029_v30 = vcombine.high %v2025_v26, %v2025_v26 }
0x14fc   :  { %v913_v22 = vpop.permute.xlu0 %912 }
0x14fd   :  { %935 = vst.msk [vmem:[#allocation8 + $0xa] sm:$0x1] %vm357_vm2, %v913_v22  ;;  %v2061_v22 = vrot.slane %v2029_v30, %v3333_v6 }
0x14ff   :  { %910 = vrot.lane.b32.xlu1 %v881_v31, %s3040_s3  ;;  %v2251_v31 = vmul.f32 %v3424_v57, %v3307_v41 }
0x1500   :  { %v917_v9 = vpop.permute.xlu0 %916 }
0x1501   :  { %937 = vst.msk [vmem:[#allocation8 + $0x1a] sm:$0x1] %vm357_vm2, %v917_v9 }
0x1503   :  { %914 = vrot.lane.b32.xlu1 %v889_v13, %s3040_s3 }
0x1504   :  { %v921_v27 = vpop.permute.xlu0 %920 }
0x1505   :  { %939 = vst.msk [vmem:[#allocation8 + $0x2a] sm:$0x1] %vm357_vm2, %v921_v27  ;;  %v1420_v27 = vcombine.high %v3491_v47, %v3491_v47 }
0x1507   :  { %918 = vrot.lane.b32.xlu1 %v897_v36, %s3040_s3  ;;  %v1442_v39 = vrot.slane %v1420_v27, %v3317_v59 }
0x1508   :  { %v925_v20 = vpop.permute.xlu0 %924 }
0x1509   :  { %941 = vst.msk [vmem:[#allocation8 + $0x3a] sm:$0x1] %vm357_vm2, %v925_v20  ;;  %v1452_v40 = vcombine.high %v1442_v39, %v1442_v39 }
0x150b   :  { %922 = vrot.lane.b32.xlu1 %v905_v38, %s3040_s3  ;;  %v1197_v38 = vrot.slane %v1165_v37, %v3333_v6 }
0x150c   :  { %v1201_v33 = vpop.permute.xlu0 %1200 }
0x150d   :  { %1223 = vst.msk [vmem:[#allocation8 + $0xb] sm:$0x1] %vm357_vm2, %v1201_v33 }
0x150f   :  { %1198 = vrot.lane.b32.xlu1 %v1169_v1, %s3040_s3  ;;  %v1461_v1 = vrot.slane %v1442_v39, %v3333_v6 }
0x1510   :  { %v1205_v0 = vpop.permute.xlu0 %1204 }
0x1511   :  { %1225 = vst.msk [vmem:[#allocation8 + $0x1b] sm:$0x1] %vm357_vm2, %v1205_v0  ;;  %v1469_v0 = vrot.slane %v1452_v40, %v3333_v6 }
0x1513   :  { %1202 = vrot.lane.b32.xlu1 %v1177_v12, %s3040_s3  ;;  %v1435_v12 = vrot.slane %v3497_v49, %v3317_v59 }
0x1514   :  { %v1209_v5 = vpop.permute.xlu0 %1208 }
0x1515   :  { %1227 = vst.msk [vmem:[#allocation8 + $0x2b] sm:$0x1] %vm357_vm2, %v1209_v5  ;;  %v1473_v5 = vrot.slane %v1435_v12, %v3333_v6  ;;  %v1451_v45 = vcombine.high %v1435_v12, %v1435_v12 }
0x1517   :  { %1206 = vrot.lane.b32.xlu1 %v1185_v48, %s3040_s3  ;;  %v1481_v48 = vrot.slane %v1451_v45, %v3333_v6 }
0x151b   :  { %1210 = vrot.lane.b32.xlu1 %v1193_v44, %s3040_s3  ;;  %v1745_v44 = vrot.slane %v1716_v42, %v3333_v6 }
0x151f   :  { %1486 = vrot.lane.b32.xlu1 %v1457_v2, %s3040_s3 }
0x1523   :  { %1490 = vrot.lane.b32.xlu1 %v1465_v55, %s3040_s3  ;;  %v1761_v55 = vrot.slane %v1723_v53, %v3333_v6 }
0x1527   :  { %1496 = vrot.lane.b32.xlu1 %v1477_v63, %s3040_s3  ;;  %v2004_v63 = vrot.slane %v3532_v14, %v3317_v59  ;;  %v2049_v14 = vrot.slane %v2011_v29, %v3333_v6 }
0x1529   :  { %v2033_v7 = vrot.slane %v2004_v63, %v3333_v6 }
0x152b   :  { %1500 = vrot.lane.b32.xlu1 %v1485_v8, %s3040_s3  ;;  %v2026_v8 = vcombine.high %v2004_v63, %v2004_v63 }
0x152f   :  { %1776 = vrot.lane.b32.xlu1 %v1749_v10, %s3040_s3  ;;  %v2041_v10 = vrot.slane %v2026_v8, %v3333_v6 }
0x1533   :  { %1780 = vrot.lane.b32.xlu1 %v1757_v4, %s3040_s3  ;;  %v2027_v4 = vcombine.high %v2011_v29, %v2011_v29 }
0x1535   :  { %v2057_v17 = vrot.slane %v2027_v4, %v3333_v6 }
0x1537   :  { %1784 = vrot.lane.b32.xlu1 %v1765_v18, %s3040_s3 }
0x153b   :  { %1788 = vrot.lane.b32.xlu1 %v1773_v23, %s3040_s3 }
0x153f   :  { %2064 = vrot.lane.b32.xlu1 %v2037_v11, %s3040_s3 }
0x1543   :  { %2068 = vrot.lane.b32.xlu1 %v2045_v56, %s3040_s3 }
0x1547   :  { %2072 = vrot.lane.b32.xlu1 %v2053_v28, %s3040_s3 }
0x154b   :  { %2076 = vrot.lane.b32.xlu1 %v2061_v22, %s3040_s3 }
0x154d   :  { %v2259_v32 = vpop.permute.xlu1 %2258 }
0x154e   :  { %v3562_v9 = vadd.f32 %v2259_v32, %v2251_v31 }
0x1550   :  { %2889 = vtanh.f32 %v3562_v9 }
0x1551   :  { %v336_v13 = vpop.permute.xlu1 %335 }
0x1552   :  { %359 = vst.msk [vmem:[#allocation8 + $0x8] sm:$0x1] %vm357_vm2, %v336_v13 }
0x1555   :  { %v338_v34 = vpop.permute.xlu1 %337 }
0x1556   :  { %360 = vst.msk [vmem:[#allocation8 + $0x10] sm:$0x1] %vm357_vm2, %v338_v34 }
0x1559   :  { %v342_v36 = vpop.permute.xlu1 %341 }
0x155a   :  { %v2890_v20 = vpop.eup %2889  ;;  %362 = vst.msk [vmem:[#allocation8 + $0x20] sm:$0x1] %vm357_vm2, %v342_v36 }
0x155b   :  { %2264 = vrot.lane.b32.xlu0 %v2890_v20, %s3039_s12 }
0x155d   :  { %v346_v41 = vpop.permute.xlu1 %345 }
0x155e   :  { %364 = vst.msk [vmem:[#allocation8 + $0x30] sm:$0x1] %vm357_vm2, %v346_v41 }
0x155f   :  { %1212 = vrot.lane.b32.xlu0 %v1197_v38, %s3040_s3 }
0x1561   :  { %v623_v33 = vpop.permute.xlu1 %622 }
0x1562   :  { %646 = vst.msk [vmem:[#allocation8 + $0x1] sm:$0x1] %vm357_vm2, %v623_v33 }
0x1563   :  { %1488 = vrot.lane.b32.xlu0 %v1461_v1, %s3040_s3 }
0x1565   :  { %v627_v51 = vpop.permute.xlu1 %626 }
0x1566   :  { %648 = vst.msk [vmem:[#allocation8 + $0x11] sm:$0x1] %vm357_vm2, %v627_v51 }
0x1567   :  { %1492 = vrot.lane.b32.xlu0 %v1469_v0, %s3040_s3 }
0x1569   :  { %v631_v43 = vpop.permute.xlu1 %630 }
0x156a   :  { %650 = vst.msk [vmem:[#allocation8 + $0x21] sm:$0x1] %vm357_vm2, %v631_v43 }
0x156b   :  { %1494 = vrot.lane.b32.xlu0 %v1473_v5, %s3040_s3 }
0x156d   :  { %v635_v47 = vpop.permute.xlu1 %634 }
0x156e   :  { %652 = vst.msk [vmem:[#allocation8 + $0x31] sm:$0x1] %vm357_vm2, %v635_v47 }
0x156f   :  { %1498 = vrot.lane.b32.xlu0 %v1481_v48, %s3040_s3 }
0x1571   :  { %v911_v49 = vpop.permute.xlu1 %910 }
0x1572   :  { %934 = vst.msk [vmem:[#allocation8 + $0x2] sm:$0x1] %vm357_vm2, %v911_v49 }
0x1573   :  { %1774 = vrot.lane.b32.xlu0 %v1745_v44, %s3040_s3 }
0x1575   :  { %v915_v2 = vpop.permute.xlu1 %914 }
0x1576   :  { %936 = vst.msk [vmem:[#allocation8 + $0x12] sm:$0x1] %vm357_vm2, %v915_v2 }
0x1577   :  { %1778 = vrot.lane.b32.xlu0 %v1753_v52, %s3040_s3 }
0x1579   :  { %v919_v54 = vpop.permute.xlu1 %918 }
0x157a   :  { %938 = vst.msk [vmem:[#allocation8 + $0x22] sm:$0x1] %vm357_vm2, %v919_v54 }
0x157b   :  { %1782 = vrot.lane.b32.xlu0 %v1761_v55, %s3040_s3 }
0x157d   :  { %v923_v61 = vpop.permute.xlu1 %922 }
0x157e   :  { %940 = vst.msk [vmem:[#allocation8 + $0x32] sm:$0x1] %vm357_vm2, %v923_v61 }
0x157f   :  { %1786 = vrot.lane.b32.xlu0 %v1769_v62, %s3040_s3 }
0x1581   :  { %v1199_v60 = vpop.permute.xlu1 %1198 }
0x1582   :  { %1222 = vst.msk [vmem:[#allocation8 + $0x3] sm:$0x1] %vm357_vm2, %v1199_v60 }
0x1583   :  { %2062 = vrot.lane.b32.xlu0 %v2033_v7, %s3040_s3 }
0x1585   :  { %v1203_v35 = vpop.permute.xlu1 %1202 }
0x1586   :  { %1224 = vst.msk [vmem:[#allocation8 + $0x13] sm:$0x1] %vm357_vm2, %v1203_v35 }
0x1587   :  { %2066 = vrot.lane.b32.xlu0 %v2041_v10, %s3040_s3 }
0x1589   :  { %v1207_v16 = vpop.permute.xlu1 %1206 }
0x158a   :  { %1226 = vst.msk [vmem:[#allocation8 + $0x23] sm:$0x1] %vm357_vm2, %v1207_v16 }
0x158b   :  { %2070 = vrot.lane.b32.xlu0 %v2049_v14, %s3040_s3 }
0x158d   :  { %v1211_v15 = vpop.permute.xlu1 %1210 }
0x158e   :  { %1228 = vst.msk [vmem:[#allocation8 + $0x33] sm:$0x1] %vm357_vm2, %v1211_v15 }
0x158f   :  { %2074 = vrot.lane.b32.xlu0 %v2057_v17, %s3040_s3 }
0x1591   :  { %v1487_v3 = vpop.permute.xlu1 %1486 }
0x1592   :  { %1510 = vst.msk [vmem:[#allocation8 + $0x4] sm:$0x1] %vm357_vm2, %v1487_v3 }
0x1595   :  { %v1491_v18 = vpop.permute.xlu1 %1490 }
0x1596   :  { %1512 = vst.msk [vmem:[#allocation8 + $0x14] sm:$0x1] %vm357_vm2, %v1491_v18 }
0x1599   :  { %v1497_v19 = vpop.permute.xlu1 %1496 }
0x159a   :  { %1515 = vst.msk [vmem:[#allocation8 + $0x2c] sm:$0x1] %vm357_vm2, %v1497_v19 }
0x159d   :  { %v1501_v21 = vpop.permute.xlu1 %1500 }
0x159e   :  { %1517 = vst.msk [vmem:[#allocation8 + $0x3c] sm:$0x1] %vm357_vm2, %v1501_v21 }
0x15a1   :  { %v1777_v23 = vpop.permute.xlu1 %1776 }
0x15a2   :  { %1799 = vst.msk [vmem:[#allocation8 + $0xd] sm:$0x1] %vm357_vm2, %v1777_v23 }
0x15a5   :  { %v1781_v24 = vpop.permute.xlu1 %1780 }
0x15a6   :  { %1801 = vst.msk [vmem:[#allocation8 + $0x1d] sm:$0x1] %vm357_vm2, %v1781_v24 }
0x15a9   :  { %v1785_v11 = vpop.permute.xlu1 %1784 }
0x15aa   :  { %1803 = vst.msk [vmem:[#allocation8 + $0x2d] sm:$0x1] %vm357_vm2, %v1785_v11 }
0x15ad   :  { %v1789_v46 = vpop.permute.xlu1 %1788 }
0x15ae   :  { %1805 = vst.msk [vmem:[#allocation8 + $0x3d] sm:$0x1] %vm357_vm2, %v1789_v46 }
0x15b1   :  { %v2065_v25 = vpop.permute.xlu1 %2064 }
0x15b2   :  { %2087 = vst.msk [vmem:[#allocation8 + $0xe] sm:$0x1] %vm357_vm2, %v2065_v25 }
0x15b5   :  { %v2069_v56 = vpop.permute.xlu1 %2068 }
0x15b6   :  { %2089 = vst.msk [vmem:[#allocation8 + $0x1e] sm:$0x1] %vm357_vm2, %v2069_v56 }
0x15b9   :  { %v2073_v26 = vpop.permute.xlu1 %2072 }
0x15ba   :  { %2091 = vst.msk [vmem:[#allocation8 + $0x2e] sm:$0x1] %vm357_vm2, %v2073_v26 }
0x15bd   :  { %v2077_v28 = vpop.permute.xlu1 %2076 }
0x15be   :  { %2093 = vst.msk [vmem:[#allocation8 + $0x3e] sm:$0x1] %vm357_vm2, %v2077_v28 }
0x15cd   :  { %v2265_v30 = vpop.permute.xlu0 %2264 }
0x15ce   :  { %v2267_v22 = vmul.f32 %v3424_v57, %v2265_v30 }
0x15d0   :  { %v2269_v31 = vcombine.high %v2267_v22, %v2267_v22  ;;  %v2276_v32 = vrot.slane %v2267_v22, %v3317_v59  ;;  %2382 = vrot.lane.b32.xlu1 %v2267_v22, %s3040_s3 }
0x15d1   :  { %v1213_v13 = vpop.permute.xlu0 %1212 }
0x15d2   :  { %v2283_v34 = vrot.slane %v2269_v31, %v3317_v59  ;;  %v2284_v27 = vcombine.high %v2276_v32, %v2276_v32  ;;  %1229 = vst.msk [vmem:[#allocation8 + $0x3b] sm:$0x1] %vm357_vm2, %v1213_v13  ;;  %v2292_v36 = vrot.slane %v2276_v32, %v3317_v59 }
0x15d4   :  { %v2321_v37 = vrot.slane %v2292_v36, %v3333_v6  ;;  %v2306_v20 = vrot.slane %v2284_v27, %v3317_v59  ;;  %v2314_v41 = vcombine.high %v2292_v36, %v2292_v36  ;;  %v2285_v33 = vcombine.high %v2283_v34, %v2283_v34 }
0x15d5   :  { %v1489_v38 = vpop.permute.xlu0 %1488  ;;  %v2299_v40 = vrot.slane %v2283_v34, %v3317_v59 }
0x15d6   :  { %1511 = vst.msk [vmem:[#allocation8 + $0xc] sm:$0x1] %vm357_vm2, %v1489_v38  ;;  %2350 = vrot.lane.b32.xlu0 %v2321_v37, %s3040_s3  ;;  %v2325_v57 = vrot.slane %v2306_v20, %v3333_v6  ;;  %v2316_v39 = vcombine.high %v2306_v20, %v2306_v20  ;;  %v2329_v1 = vrot.slane %v2314_v41, %v3333_v6 }
0x15d7   :  { %v2313_v12 = vrot.slane %v2285_v33, %v3317_v59  ;;  %v2337_v43 = vrot.slane %v2299_v40, %v3333_v6  ;;  %v2315_v5 = vcombine.high %v2299_v40, %v2299_v40 }
0x15d8   :  { %2352 = vrot.lane.b32.xlu1 %v2325_v57, %s3040_s3  ;;  %v2333_v0 = vrot.slane %v2316_v39, %v3333_v6 }
0x15d9   :  { %v1493_v51 = vpop.permute.xlu0 %1492  ;;  %v2341_v47 = vrot.slane %v2313_v12, %v3333_v6  ;;  %v2317_v48 = vcombine.high %v2313_v12, %v2313_v12  ;;  %v2345_v42 = vrot.slane %v2315_v5, %v3333_v6 }
0x15da   :  { %1513 = vst.msk [vmem:[#allocation8 + $0x1c] sm:$0x1] %vm357_vm2, %v1493_v51  ;;  %2354 = vrot.lane.b32.xlu0 %v2329_v1, %s3040_s3 }
0x15db   :  { %v2349_v59 = vrot.slane %v2317_v48, %v3333_v6 }
0x15dc   :  { %2356 = vrot.lane.b32.xlu1 %v2333_v0, %s3040_s3 }
0x15dd   :  { %v1495_v45 = vpop.permute.xlu0 %1494 }
0x15de   :  { %1514 = vst.msk [vmem:[#allocation8 + $0x24] sm:$0x1] %vm357_vm2, %v1495_v45  ;;  %2358 = vrot.lane.b32.xlu0 %v2337_v43, %s3040_s3 }
0x15e0   :  { %2360 = vrot.lane.b32.xlu1 %v2341_v47, %s3040_s3 }
0x15e1   :  { %v1499_v49 = vpop.permute.xlu0 %1498 }
0x15e2   :  { %1516 = vst.msk [vmem:[#allocation8 + $0x34] sm:$0x1] %vm357_vm2, %v1499_v49  ;;  %2362 = vrot.lane.b32.xlu0 %v2345_v42, %s3040_s3 }
0x15e4   :  { %2364 = vrot.lane.b32.xlu1 %v2349_v59, %s3040_s3 }
0x15e5   :  { %v1775_v44 = vpop.permute.xlu0 %1774 }
0x15e6   :  { %1798 = vst.msk [vmem:[#allocation8 + $0x5] sm:$0x1] %vm357_vm2, %v1775_v44  ;;  %2387 = vrot.lane.b32.xlu0 %v3562_v9, %s3042_s13 }
0x15e9   :  { %v1779_v50 = vpop.permute.xlu0 %1778 }
0x15ea   :  { %1800 = vst.msk [vmem:[#allocation8 + $0x15] sm:$0x1] %vm357_vm2, %v1779_v50 }
0x15ed   :  { %v1783_v2 = vpop.permute.xlu0 %1782 }
0x15ee   :  { %1802 = vst.msk [vmem:[#allocation8 + $0x25] sm:$0x1] %vm357_vm2, %v1783_v2 }
0x15f1   :  { %v1787_v52 = vpop.permute.xlu0 %1786 }
0x15f2   :  { %1804 = vst.msk [vmem:[#allocation8 + $0x35] sm:$0x1] %vm357_vm2, %v1787_v52 }
0x15f5   :  { %v2063_v53 = vpop.permute.xlu0 %2062 }
0x15f6   :  { %2086 = vst.msk [vmem:[#allocation8 + $0x6] sm:$0x1] %vm357_vm2, %v2063_v53 }
0x15f9   :  { %v2067_v6 = vpop.permute.xlu0 %2066 }
0x15fa   :  { %2088 = vst.msk [vmem:[#allocation8 + $0x16] sm:$0x1] %vm357_vm2, %v2067_v6 }
0x15fd   :  { %v2071_v54 = vpop.permute.xlu0 %2070 }
0x15fe   :  { %2090 = vst.msk [vmem:[#allocation8 + $0x26] sm:$0x1] %vm357_vm2, %v2071_v54 }
0x1601   :  { %v2075_v55 = vpop.permute.xlu0 %2074 }
0x1602   :  { %2092 = vst.msk [vmem:[#allocation8 + $0x36] sm:$0x1] %vm357_vm2, %v2075_v55 }
0x1642   :  { %v2383_v9 = vpop.permute.xlu1 %2382 }
0x1643   :  { %2385 = vst.msk [vmem:[#allocation9] sm:$0xff] %vm73_vm1, %v2383_v9 }
0x1644   :  { %2968 = shalt.err (!%p2965_p0)
}
0x1645   :  { %s2969_s19 = scalar_lea.hbm %s3727_s5, 128 }
0x1646   :  { %p2970_p1 = scmp.ne.s32.totalorder %s3727_s5, %s2969_s19  ;;  %p2973_p2 = scmp.lt.u32.totalorder %s2969_s19, %s3727_s5 }
0x1648   :  { %p2975_p3 = pnand %p2973_p2, %p2970_p1 }
0x164a   :  { %2978 = shalt.err (!%p2975_p3)
}
0x164b   :  { %2412 = dma.vmem_to_hbm [thread:$0]  %s2410_s15, 128, %s3727_s5, [#allocation10]   ;;  %v2351_v58 = vpop.permute.xlu0 %2350  ;;  %v2353_v61 = vpop.permute.xlu1 %2352 }
0x164c   :  { %2374 = vst.msk [vmem:[#allocation8 + $0x7] sm:$0x1] %vm357_vm2, %v2351_v58  ;;  %2375 = vst.msk [vmem:[#allocation8 + $0xf] sm:$0x1] %vm357_vm2, %v2353_v61  ;;  %s3044_s26 = smov [#allocation8]   ;;  %s3045_s5 = smov [#allocation11]  }
0x164d   :  { %s2396_s27 = sshll.u32 %s3044_s26, 4  ;;  %s2419_s28 = sshll.u32 %s3045_s5, 4  ;;  %s2397_s27 = int_to_ptr.vmem [resolvable:$true] %s2396_s27  ;;  %s2420_s28 = int_to_ptr.vmem [resolvable:$true] %s2419_s28 }
0x164e   :  { %s2979_s29 = scalar_lea.vmem %s2397_s27, 1024  ;;  %p2984_p5 = scmp.lt.s32.totalorder %s2397_s27, %s2397_s27 }
0x164f   :  { %v2355_v62 = vpop.permute.xlu0 %2354  ;;  %v2357_v63 = vpop.permute.xlu1 %2356  ;;  %p2980_p4 = scmp.ne.s32.totalorder %s2397_s27, %s2979_s29  ;;  %p2985_p6 = scmp.lt.s32.totalorder %s2979_s29, %s2979_s29 }
0x1650   :  { %2376 = vst.msk [vmem:[#allocation8 + $0x17] sm:$0x1] %vm357_vm2, %v2355_v62  ;;  %2377 = vst.msk [vmem:[#allocation8 + $0x1f] sm:$0x1] %vm357_vm2, %v2357_v63 }
0x1651   :  { %p2986_p7 = por %p2985_p6, %p2984_p5 }
0x1653   :  { %v2359_v60 = vpop.permute.xlu0 %2358  ;;  %v2361_v7 = vpop.permute.xlu1 %2360  ;;  %p2987_p8 = pnand %p2986_p7, %p2980_p4 }
0x1654   :  { %2378 = vst.msk [vmem:[#allocation8 + $0x27] sm:$0x1] %vm357_vm2, %v2359_v60  ;;  %2379 = vst.msk [vmem:[#allocation8 + $0x2f] sm:$0x1] %vm357_vm2, %v2361_v7 }
0x1657   :  { %v2363_v8 = vpop.permute.xlu0 %2362  ;;  %v2365_v35 = vpop.permute.xlu1 %2364 }
0x1658   :  { %2380 = vst.msk [vmem:[#allocation8 + $0x37] sm:$0x1] %vm357_vm2, %v2363_v8  ;;  %2381 = vst.msk [vmem:[#allocation8 + $0x3f] sm:$0x1] %vm357_vm2, %v2365_v35 }
0x165b   :  { %v2388_v10 = vpop.permute.xlu0 %2387 }
0x165c   :  { %2990 = shalt.err (!%p2987_p8)
}
0x165d   :  { %s2991_s8 = scalar_lea.hbm %s3726_s4, 1024 }
0x165e   :  { %p2992_p9 = scmp.ne.s32.totalorder %s3726_s4, %s2991_s8  ;;  %p2995_p10 = scmp.lt.u32.totalorder %s2991_s8, %s3726_s4 }
0x1660   :  { %p2997_p11 = pnand %p2995_p10, %p2992_p9 }
0x1662   :  { %3000 = shalt.err (!%p2997_p11)
}
0x1663   :  { %2402 = dma.vmem_to_hbm [thread:$0]  %s2397_s27, 1024, %s3726_s4, [#allocation4], %s3033_s9, %s3033_s9, %s3034_s10   ;;  %2390 = vst.msk [vmem:[#allocation11] sm:$0xff] %vm73_vm1, %v2388_v10 }
0x1664   :  { %s3001_s13 = scalar_lea.vmem %s2420_s28, 128  ;;  %p3006_p13 = scmp.lt.s32.totalorder %s2420_s28, %s2420_s28 }
0x1665   :  { %p3002_p12 = scmp.ne.s32.totalorder %s2420_s28, %s3001_s13  ;;  %p3007_p0 = scmp.lt.s32.totalorder %s3001_s13, %s3001_s13 }
0x1667   :  { %p3008_p1 = por %p3007_p0, %p3006_p13 }
0x1669   :  { %p3009_p2 = pnand %p3008_p1, %p3002_p12 }
0x166b   :  { %3012 = shalt.err (!%p3009_p2)
}
0x166c   :  { %s3013_s16 = scalar_lea.hbm %s3728_s6, 128 }
0x166d   :  { %p3014_p3 = scmp.ne.s32.totalorder %s3728_s6, %s3013_s16  ;;  %p3017_p4 = scmp.lt.u32.totalorder %s3013_s16, %s3728_s6 }
0x166f   :  { %p3019_p5 = pnand %p3017_p4, %p3014_p3 }
0x1671   :  { %3022 = shalt.err (!%p3019_p5)
}
0x1672   :  { %2422 = dma.vmem_to_hbm [thread:$0]  %s2420_s28, 128, %s3728_s6, [#allocation10]  }
0x1673   :  { %3027 = dma.done.wait [#allocation4], 1024  }
0x1674   :  { %3028 = vsyncadd [#allocation4], 4294966272 }
0x1675   :  { %3029 = dma.done.wait [#allocation10], 256  }
0x1676   :  { %3030 = vsyncadd [#allocation10], 4294967040 }
0x1677   :  { %2432 = vsyncpa [#allocation3], 1 }
0x1678   :  { %2433 = vsyncpa [#allocation6], 1 }
0x1679   :  { %2434 = vsyncpa [#allocation4], 1 }
0x167a   :  { %2435 = vsyncpa [#allocation10], 1 }

</bundles_post_ra>
